<compile_context>
chip_gen: v6e
topology: v6e:2x2x1
jax: 0.10.0
libtpu: 0.0.40
codegen_flags: <defaults>
</compile_context>

<pallas_src>
import math
import functools

import jax
import jax.numpy as jnp
from jax import lax
from jax.experimental import pallas as pl
from jax.experimental.pallas import tpu as pltpu


# ----------------------------------------------------------------------------
# Single fused kernel: projections + multi-head attention for Bt batch elements
# ----------------------------------------------------------------------------
def _fused_kernel(*refs, num_heads, down_head_dim, head_dim, block_b,
                  has_mask, mask_per_batch, mask_per_head, need_weights):
    (xq_ref, xk_ref, xv_ref, qw_ref, qb_ref,
     kw_ref, kb_ref, vw_ref, vb_ref) = refs[:9]
    pos = 9
    m_ref = None
    if has_mask:
        m_ref = refs[pos]
        pos += 1
    o_ref = refs[pos]
    pos += 1
    w_ref = refs[pos] if need_weights else None

    f32 = jnp.float32
    Bt = block_b
    H, dhd, hd = num_heads, down_head_dim, head_dim
    Q = xq_ref.shape[1]
    K = xk_ref.shape[1]
    d_in_q = xq_ref.shape[2]
    d_in_v = xv_ref.shape[2]
    cdt = qw_ref.dtype                      # MXU compute dtype (bf16 or f32)

    # ---- dense projections over the whole (Bt * seq) block -----------------
    # Weights are pre-transposed host-side to (Din, Dout); scale is folded in.
    xq = xq_ref[...].reshape(Bt * Q, d_in_q).astype(cdt)
    xk = xk_ref[...].reshape(Bt * K, d_in_q).astype(cdt)
    xv = xv_ref[...].reshape(Bt * K, d_in_v).astype(cdt)

    q_all = jnp.dot(xq, qw_ref[...], preferred_element_type=f32) + qb_ref[...]  # (Bt*Q, Dd) f32, scaled
    k_all = jnp.dot(xk, kw_ref[...], preferred_element_type=f32) + kb_ref[...]  # (Bt*K, Dd) f32
    v_all = (jnp.dot(xv, vw_ref[...], preferred_element_type=f32)
             + vb_ref[...]).astype(o_ref.dtype)                                 # (Bt*K, De)

    # ---- mask (PyTorch: masked_fill(mask == 0, -1e4), then add) ------------
    madd = None
    if m_ref is not None:
        mraw = m_ref[...].astype(f32)
        madd = jnp.where(mraw == 0.0, jnp.float32(-10000.0), mraw)

    # ---- per (batch-element, head) attention; everything stays in VMEM -----
    # TODO(synk): at deployment head counts, replace this unrolled loop with a
    # head-batched lax.dot_general (leading H batch dim); per-head 2-D matmuls
    # are kept here for robust Mosaic lowering of the fused head split.
    for b in range(Bt):
        q_rows = q_all[b * Q:(b + 1) * Q]        # (Q, down_dim)  f32, pre-scaled
        k_rows = k_all[b * K:(b + 1) * K]        # (K, down_dim)  f32
        v_rows = v_all[b * K:(b + 1) * K]        # (K, embed_dim) value dtype
        for h in range(H):
            qh = q_rows[:, h * dhd:(h + 1) * dhd]    # (Q, dhd)
            kh = k_rows[:, h * dhd:(h + 1) * dhd]    # (K, dhd)
            vh = v_rows[:, h * hd:(h + 1) * hd]      # (K, hd)

            # Q @ K^T without transposing K: contract the last dims on the MXU.
            s = lax.dot_general(qh, kh, (((1,), (1,)), ((), ())),
                                preferred_element_type=f32)          # (Q, K)
            if madd is not None:
                s = s + madd[b if mask_per_batch else 0,
                             h if mask_per_head else 0]

            # exact-f32 softmax (matches the PyTorch module's explicit upcast)
            s = s - jnp.max(s, axis=-1, keepdims=True)
            p = jnp.exp(s)
            p = p * pl.reciprocal(jnp.sum(p, axis=-1, keepdims=True),
                                  approx=True)                       # EUP vrcp

            if w_ref is not None:
                w_ref[b, h] = p.astype(w_ref.dtype)

            pv = jnp.dot(p.astype(vh.dtype), vh, preferred_element_type=f32)
            # direct static lane-slice store of the merged-head output block
            o_ref[b, :, h * hd:(h + 1) * hd] = pv.astype(o_ref.dtype)


def _pick_block_b(bsz, max_block=8):
    """Largest divisor of bsz (capped) that still leaves >= 2 grid steps when
    bsz >= 2, so both v7x TensorCores get work on the "parallel" batch axis."""
    best = 1
    for cand in range(1, min(max_block, bsz) + 1):
        if bsz % cand == 0 and (bsz == 1 or bsz // cand >= 2):
            best = cand
    return best


# ----------------------------------------------------------------------------
# Module wrapper mirroring lqformerattention.forward
# ----------------------------------------------------------------------------
class LQFormerAttention:
    def __init__(self, embed_dim, num_heads, down_dim, up_dim, key,
                 compute_dtype=jnp.bfloat16):
        self.num_heads = num_heads
        self.down_dim = down_dim
        self.embed_dim = embed_dim
        self.down_head_dim = down_dim // num_heads
        self.head_dim = embed_dim // num_heads
        self.up_dim = up_dim  # unused in forward (matches the PyTorch module)
        self.compute_dtype = compute_dtype

        k = jax.random.split(key, 6)
        s_q = 1.0 / math.sqrt(down_dim)
        s_v = 1.0 / math.sqrt(embed_dim)
        # f32 master parameters; nn.Linear layout: weight = (out_features, in_features).
        self.q_w = jax.random.uniform(k[0], (down_dim, down_dim), jnp.float32, -s_q, s_q)
        self.q_b = jax.random.uniform(k[1], (down_dim,), jnp.float32, -s_q, s_q)
        self.k_w = jax.random.uniform(k[2], (down_dim, down_dim), jnp.float32, -s_q, s_q)
        self.k_b = jax.random.uniform(k[3], (down_dim,), jnp.float32, -s_q, s_q)
        self.v_w = jax.random.uniform(k[4], (embed_dim, embed_dim), jnp.float32, -s_v, s_v)
        self.v_b = jax.random.uniform(k[5], (embed_dim,), jnp.float32, -s_v, s_v)

        scale = 1.0 / math.sqrt(self.down_head_dim)
        # Kernel-side copies: pre-transposed to (Din, Dout) so the kernel never
        # evaluates W.T, with 1/sqrt(down_head_dim) folded into the q projection,
        # cast to the MXU compute dtype (biases stay f32).
        self.q_wt = (self.q_w.T * scale).astype(compute_dtype)
        self.k_wt = self.k_w.T.astype(compute_dtype)
        self.v_wt = self.v_w.T.astype(compute_dtype)
        self.q_b2 = (self.q_b * scale).reshape(1, down_dim)
        self.k_b2 = self.k_b.reshape(1, down_dim)
        self.v_b2 = self.v_b.reshape(1, embed_dim)

    def __call__(self, query, key, value, attention_mask=None,
                 need_weights=True, block_b=None):
        bsz, q_len, _ = query.shape
        k_len = key.shape[1]
        v_len = value.shape[1]
        assert k_len == v_len, "key/value sequence lengths must match"
        H, Dd, De = self.num_heads, self.down_dim, self.embed_dim

        Bt = block_b if block_b is not None else _pick_block_b(bsz)
        assert bsz % Bt == 0
        grid = (bsz // Bt,)

        in_specs = [
            pl.BlockSpec((Bt, q_len, Dd), lambda b: (b, 0, 0)),   # query block
            pl.BlockSpec((Bt, k_len, Dd), lambda b: (b, 0, 0)),   # key block
            pl.BlockSpec((Bt, v_len, De), lambda b: (b, 0, 0)),   # value block
            # Grid-invariant weights/biases: constant index_map keeps them resident.
            # TODO(synk): at deployment dims add pipeline_mode=pl.Buffered(1) on
            # these weight specs (single-buffer) and/or tile De so v7x's 64 MiB /
            # v5e's scoped VMEM limits are respected.
            pl.BlockSpec((Dd, Dd), lambda b: (0, 0)),             # q_wt (scaled)
            pl.BlockSpec((1, Dd), lambda b: (0, 0)),              # q_b  (scaled)
            pl.BlockSpec((Dd, Dd), lambda b: (0, 0)),             # k_wt
            pl.BlockSpec((1, Dd), lambda b: (0, 0)),              # k_b
            pl.BlockSpec((De, De), lambda b: (0, 0)),             # v_wt
            pl.BlockSpec((1, De), lambda b: (0, 0)),              # v_b
        ]
        args = [query, key, value, self.q_wt, self.q_b2, self.k_wt, self.k_b2,
                self.v_wt, self.v_b2]

        has_mask = attention_mask is not None
        mask_per_batch = mask_per_head = False
        if has_mask:
            m = jnp.asarray(attention_mask, jnp.float32)
            if m.ndim == 2:
                m = m[None, None]
            elif m.ndim == 3:
                m = m[:, None]
            elif m.ndim != 4:
                raise ValueError("attention_mask must have 2, 3 or 4 dims")
            Bm, Hm = m.shape[0], m.shape[1]
            if Bm not in (1, bsz) or Hm not in (1, H):
                raise ValueError("mask batch/head dims must be 1 or match B/H")
            m = jnp.broadcast_to(m, (Bm, Hm, q_len, k_len))
            mask_per_batch = Bm != 1
            mask_per_head = Hm != 1
            if mask_per_batch:
                in_specs.append(pl.BlockSpec((Bt, Hm, q_len, k_len),
                                             lambda b: (b, 0, 0, 0)))
            else:
                # Batch-invariant mask: one resident block, no B-fold HBM copies.
                in_specs.append(pl.BlockSpec((1, Hm, q_len, k_len),
                                             lambda b: (0, 0, 0, 0)))
            args.append(m)

        out_dtype = value.dtype
        o_shape = jax.ShapeDtypeStruct((bsz, q_len, De), out_dtype)
        o_spec = pl.BlockSpec((Bt, q_len, De), lambda b: (b, 0, 0))
        if need_weights:
            out_shape = (o_shape,
                         jax.ShapeDtypeStruct((bsz, H, q_len, k_len), out_dtype))
            out_specs = (o_spec,
                         pl.BlockSpec((Bt, H, q_len, k_len), lambda b: (b, 0, 0, 0)))
        else:
            out_shape = o_shape
            out_specs = o_spec

        # Rough VMEM budget: double-buffered blocks + headroom for intermediates.
        isz_c = jnp.dtype(self.q_wt.dtype).itemsize
        isz_in = jnp.dtype(query.dtype).itemsize
        isz_out = jnp.dtype(out_dtype).itemsize
        block_bytes = (
            Bt * q_len * Dd * isz_in + Bt * k_len * Dd * isz_in
            + Bt * v_len * De * isz_in
            + (2 * Dd * Dd + De * De) * isz_c
            + (2 * Dd + De) * 4
            + Bt * q_len * De * isz_out
            + (Bt * H * q_len * k_len * isz_out if need_weights else 0)
            + ((Bt if mask_per_batch else 1) * (H if mask_per_head else 1)
               * q_len * k_len * 4 if has_mask else 0))
        vmem_limit = int(min(max(2 * block_bytes + (2 << 20), 8 << 20), 64 << 20))

        kernel = functools.partial(
            _fused_kernel, num_heads=H, down_head_dim=self.down_head_dim,
            head_dim=self.head_dim, block_b=Bt, has_mask=has_mask,
            mask_per_batch=mask_per_batch, mask_per_head=mask_per_head,
            need_weights=need_weights)

        out = pl.pallas_call(
            kernel,
            out_shape=out_shape,
            grid=grid,
            in_specs=in_specs,
            out_specs=out_specs,
            compiler_params=pltpu.CompilerParams(
                dimension_semantics=("parallel",),
                vmem_limit_bytes=vmem_limit),
        )(*args)

        if need_weights:
            return out
        return out, None


# ----------------------------------------------------------------------------
# Pure-JAX f32 reference (mirrors the PyTorch forward exactly)
# ----------------------------------------------------------------------------
def reference_forward(mod, query, key, value, attention_mask=None):
    def lin(x, w, b):
        return x @ w.T + b

    bsz, q_len, _ = query.shape
    H = mod.num_heads
    q = lin(query, mod.q_w, mod.q_b).reshape(
        bsz, q_len, H, mod.down_head_dim).transpose(0, 2, 1, 3)
    k = lin(key, mod.k_w, mod.k_b).reshape(
        bsz, key.shape[1], H, mod.down_head_dim).transpose(0, 2, 1, 3)
    v = lin(value, mod.v_w, mod.v_b).reshape(
        bsz, value.shape[1], H, mod.head_dim).transpose(0, 2, 1, 3)
    s = jnp.einsum("bhqd,bhkd->bhqk", q.astype(jnp.float32), k.astype(jnp.float32))
    s = s / math.sqrt(mod.down_head_dim)
    if attention_mask is not None:
        m = jnp.asarray(attention_mask, jnp.float32)
        m = jnp.where(m == 0.0, -10000.0, m)
        s = s + m
    p = jax.nn.softmax(s, axis=-1).astype(v.dtype)
    o = jnp.einsum("bhqk,bhkd->bhqd", p, v)
    o = o.transpose(0, 2, 1, 3).reshape(bsz, q_len, -1)
    return o, p


if __name__ == "__main__":
    EMBED_DIM, NUM_HEADS, DOWN_DIM, UP_DIM = 32, 4, 16, 64
    B, Q_LEN, KV_LEN = 4, 8, 16

    root = jax.random.PRNGKey(0)
    kp, kq, kk, kv, km1, km2, km3 = jax.random.split(root, 7)

    query = jax.random.normal(kq, (B, Q_LEN, DOWN_DIM), jnp.float32)
    key = jax.random.normal(kk, (B, KV_LEN, DOWN_DIM), jnp.float32)
    value = jax.random.normal(kv, (B, KV_LEN, EMBED_DIM), jnp.float32)

    mask_batch = (jax.random.uniform(km1, (B, 1, Q_LEN, KV_LEN)) > 0.3).astype(jnp.float32)
    mask_perhead = (jax.random.uniform(km2, (B, NUM_HEADS, Q_LEN, KV_LEN)) > 0.3).astype(jnp.float32)
    mask_shared = (jax.random.uniform(km3, (Q_LEN, KV_LEN)) > 0.3).astype(jnp.float32)

    # --- exact-semantics configuration (f32 weights on the MXU) --------------
    mod_f32 = LQFormerAttention(EMBED_DIM, NUM_HEADS, DOWN_DIM, UP_DIM, kp,
                                compute_dtype=jnp.float32)
    for name, mask in (("nomask", None), ("batch_mask", mask_batch),
                       ("perhead_mask", mask_perhead), ("shared_mask", mask_shared)):
        out, w = mod_f32(query, key, value, attention_mask=mask)
        jax.block_until_ready((out, w))
        ref_out, ref_w = reference_forward(mod_f32, query, key, value, mask)
        assert out.shape == (B, Q_LEN, EMBED_DIM)
        assert w.shape == (B, NUM_HEADS, Q_LEN, KV_LEN)
        assert jnp.allclose(out, ref_out, atol=1e-2, rtol=1e-2), f"{name}: output mismatch"
        assert jnp.allclose(w, ref_w, atol=1e-2, rtol=1e-2), f"{name}: weights mismatch"

    # --- attn_weights writeback elided (drops the largest HBM output stream) -
    out_only, w_none = mod_f32(query, key, value, attention_mask=None,
                               need_weights=False)
    jax.block_until_ready(out_only)
    ref_out, _ = reference_forward(mod_f32, query, key, value, None)
    assert w_none is None
    assert jnp.allclose(out_only, ref_out, atol=1e-2, rtol=1e-2), "need_weights=False mismatch"

    # --- bf16-weight configuration (review's perf setup), looser tolerance ---
    mod_bf16 = LQFormerAttention(EMBED_DIM, NUM_HEADS, DOWN_DIM, UP_DIM, kp,
                                 compute_dtype=jnp.bfloat16)
    out16, w16 = mod_bf16(query, key, value, attention_mask=mask_batch)
    jax.block_until_ready((out16, w16))
    ref_out16, ref_w16 = reference_forward(mod_f32, query, key, value, mask_batch)
    assert jnp.allclose(out16, ref_out16, atol=6e-2, rtol=6e-2), "bf16: output mismatch"
    assert jnp.allclose(w16, ref_w16, atol=6e-2, rtol=6e-2), "bf16: weights mismatch"

    print("KERNEL_OK")
</pallas_src>

<mosaic_0001>
module attributes {stable_mosaic.version = 11 : i64} {
  func.func @_fused_kernel(%arg0: i32, %arg1: memref<2x8x16xf32, #tpu.memory_space<vmem>>, %arg2: memref<2x16x16xf32, #tpu.memory_space<vmem>>, %arg3: memref<2x16x32xf32, #tpu.memory_space<vmem>>, %arg4: memref<16x16xf32, #tpu.memory_space<vmem>>, %arg5: memref<1x16xf32, #tpu.memory_space<vmem>>, %arg6: memref<16x16xf32, #tpu.memory_space<vmem>>, %arg7: memref<1x16xf32, #tpu.memory_space<vmem>>, %arg8: memref<32x32xf32, #tpu.memory_space<vmem>>, %arg9: memref<1x32xf32, #tpu.memory_space<vmem>>, %arg10: memref<2x8x32xf32, #tpu.memory_space<vmem>>, %arg11: memref<2x4x8x16xf32, #tpu.memory_space<vmem>>) attributes {dimension_semantics = [#tpu.dimension_semantics<parallel>], iteration_bounds = array<i64: 2>, scalar_prefetch = 0 : i64, scratch_operands = 0 : i64, tpu.core_type = #tpu.core_type<tc>, window_params = [{transform_indices = @transform_0, window_bounds = array<i64: 2, 8, 16>}, {transform_indices = @transform_1, window_bounds = array<i64: 2, 16, 16>}, {transform_indices = @transform_2, window_bounds = array<i64: 2, 16, 32>}, {pipeline_mode = #tpu.pipeline_mode<synchronous>, transform_indices = @transform_3, window_bounds = array<i64: 16, 16>}, {pipeline_mode = #tpu.pipeline_mode<synchronous>, transform_indices = @transform_4, window_bounds = array<i64: 1, 16>}, {pipeline_mode = #tpu.pipeline_mode<synchronous>, transform_indices = @transform_5, window_bounds = array<i64: 16, 16>}, {pipeline_mode = #tpu.pipeline_mode<synchronous>, transform_indices = @transform_6, window_bounds = array<i64: 1, 16>}, {pipeline_mode = #tpu.pipeline_mode<synchronous>, transform_indices = @transform_7, window_bounds = array<i64: 32, 32>}, {pipeline_mode = #tpu.pipeline_mode<synchronous>, transform_indices = @transform_8, window_bounds = array<i64: 1, 32>}, {transform_indices = @transform_9, window_bounds = array<i64: 2, 8, 32>}, {transform_indices = @transform_10, window_bounds = array<i64: 2, 4, 8, 16>}]} {
    %c0 = arith.constant 0 : index
    %c0_0 = arith.constant 0 : index
    %c0_1 = arith.constant 0 : index
    %0 = vector.load %arg1[%c0, %c0_0, %c0_1] : memref<2x8x16xf32, #tpu.memory_space<vmem>>, vector<2x8x16xf32>
    %1 = vector.shape_cast %0 : vector<2x8x16xf32> to vector<16x16xf32>
    %c0_2 = arith.constant 0 : index
    %c0_3 = arith.constant 0 : index
    %c0_4 = arith.constant 0 : index
    %2 = vector.load %arg2[%c0_2, %c0_3, %c0_4] : memref<2x16x16xf32, #tpu.memory_space<vmem>>, vector<2x16x16xf32>
    %3 = vector.shape_cast %2 : vector<2x16x16xf32> to vector<32x16xf32>
    %c0_5 = arith.constant 0 : index
    %c0_6 = arith.constant 0 : index
    %c0_7 = arith.constant 0 : index
    %4 = vector.load %arg3[%c0_5, %c0_6, %c0_7] : memref<2x16x32xf32, #tpu.memory_space<vmem>>, vector<2x16x32xf32>
    %5 = vector.shape_cast %4 : vector<2x16x32xf32> to vector<32x32xf32>
    %c0_8 = arith.constant 0 : index
    %c0_9 = arith.constant 0 : index
    %6 = vector.load %arg4[%c0_8, %c0_9] : memref<16x16xf32, #tpu.memory_space<vmem>>, vector<16x16xf32>
    %cst = arith.constant dense<0.000000e+00> : vector<16x16xf32>
    %7 = tpu.matmul %1, %6, %cst {dimension_numbers = #tpu.dot_dimension_numbers<[1], [0], [0], [1], [0, 0, 1, 1], [], []>} : vector<16x16xf32>, vector<16x16xf32>, vector<16x16xf32> -> vector<16x16xf32>
    %c0_10 = arith.constant 0 : index
    %c0_11 = arith.constant 0 : index
    %8 = vector.load %arg5[%c0_10, %c0_11] : memref<1x16xf32, #tpu.memory_space<vmem>>, vector<1x16xf32>
    %9 = vector.broadcast %8 : vector<1x16xf32> to vector<16x16xf32>
    %10 = arith.addf %7, %9 : vector<16x16xf32>
    %c0_12 = arith.constant 0 : index
    %c0_13 = arith.constant 0 : index
    %11 = vector.load %arg6[%c0_12, %c0_13] : memref<16x16xf32, #tpu.memory_space<vmem>>, vector<16x16xf32>
    %cst_14 = arith.constant dense<0.000000e+00> : vector<32x16xf32>
    %12 = tpu.matmul %3, %11, %cst_14 {dimension_numbers = #tpu.dot_dimension_numbers<[1], [0], [0], [1], [0, 0, 1, 1], [], []>} : vector<32x16xf32>, vector<16x16xf32>, vector<32x16xf32> -> vector<32x16xf32>
    %c0_15 = arith.constant 0 : index
    %c0_16 = arith.constant 0 : index
    %13 = vector.load %arg7[%c0_15, %c0_16] : memref<1x16xf32, #tpu.memory_space<vmem>>, vector<1x16xf32>
    %14 = vector.broadcast %13 : vector<1x16xf32> to vector<32x16xf32>
    %15 = arith.addf %12, %14 : vector<32x16xf32>
    %c0_17 = arith.constant 0 : index
    %c0_18 = arith.constant 0 : index
    %16 = vector.load %arg8[%c0_17, %c0_18] : memref<32x32xf32, #tpu.memory_space<vmem>>, vector<32x32xf32>
    %cst_19 = arith.constant dense<0.000000e+00> : vector<32x32xf32>
    %17 = tpu.matmul %5, %16, %cst_19 {dimension_numbers = #tpu.dot_dimension_numbers<[1], [0], [0], [1], [0, 0, 1, 1], [], []>} : vector<32x32xf32>, vector<32x32xf32>, vector<32x32xf32> -> vector<32x32xf32>
    %c0_20 = arith.constant 0 : index
    %c0_21 = arith.constant 0 : index
    %18 = vector.load %arg9[%c0_20, %c0_21] : memref<1x32xf32, #tpu.memory_space<vmem>>, vector<1x32xf32>
    %19 = vector.broadcast %18 : vector<1x32xf32> to vector<32x32xf32>
    %20 = arith.addf %17, %19 : vector<32x32xf32>
    %21 = vector.extract_strided_slice %10 {offsets = [0, 0], sizes = [8, 16], strides = [1, 1]} : vector<16x16xf32> to vector<8x16xf32>
    %22 = vector.extract_strided_slice %15 {offsets = [0, 0], sizes = [16, 16], strides = [1, 1]} : vector<32x16xf32> to vector<16x16xf32>
    %23 = vector.extract_strided_slice %20 {offsets = [0, 0], sizes = [16, 32], strides = [1, 1]} : vector<32x32xf32> to vector<16x32xf32>
    %24 = vector.extract_strided_slice %21 {offsets = [0, 0], sizes = [8, 4], strides = [1, 1]} : vector<8x16xf32> to vector<8x4xf32>
    %25 = vector.extract_strided_slice %22 {offsets = [0, 0], sizes = [16, 4], strides = [1, 1]} : vector<16x16xf32> to vector<16x4xf32>
    %26 = vector.extract_strided_slice %23 {offsets = [0, 0], sizes = [16, 8], strides = [1, 1]} : vector<16x32xf32> to vector<16x8xf32>
    %cst_22 = arith.constant dense<0.000000e+00> : vector<8x16xf32>
    %27 = tpu.matmul %24, %25, %cst_22 {dimension_numbers = #tpu.dot_dimension_numbers<[1], [1], [0], [0], [0, 0, 1, 0], [], []>} : vector<8x4xf32>, vector<16x4xf32>, vector<8x16xf32> -> vector<8x16xf32>
    %cst_23 = arith.constant dense<0xFF800000> : vector<8xf32>
    %28 = vector.multi_reduction <maximumf>, %27, %cst_23 [1] : vector<8x16xf32> to vector<8xf32>
    %29 = vector.shape_cast %28 : vector<8xf32> to vector<8x1xf32>
    %30 = vector.broadcast %29 : vector<8x1xf32> to vector<8x16xf32>
    %31 = arith.subf %27, %30 : vector<8x16xf32>
    %32 = math.exp %31 : vector<8x16xf32>
    %cst_24 = arith.constant dense<0.000000e+00> : vector<8xf32>
    %33 = vector.multi_reduction <add>, %32, %cst_24 [1] : vector<8x16xf32> to vector<8xf32>
    %34 = vector.shape_cast %33 : vector<8xf32> to vector<8x1xf32>
    %35 = tpu.reciprocal %34 {approx = true} : vector<8x1xf32> -> vector<8x1xf32>
    %36 = vector.broadcast %35 : vector<8x1xf32> to vector<8x16xf32>
    %37 = arith.mulf %32, %36 : vector<8x16xf32>
    %c0_25 = arith.constant 0 : index
    %c0_26 = arith.constant 0 : index
    %c0_27 = arith.constant 0 : index
    %c0_28 = arith.constant 0 : index
    %38 = vector.load %arg11[%c0_25, %c0_26, %c0_27, %c0_28] : memref<2x4x8x16xf32, #tpu.memory_space<vmem>>, vector<1x1x8x16xf32>
    %39 = vector.shape_cast %38 : vector<1x1x8x16xf32> to vector<8x16xf32>
    %40 = vector.shape_cast %37 : vector<8x16xf32> to vector<1x1x8x16xf32>
    tpu.vector_store %arg11[%c0_25, %c0_26, %c0_27, %c0_28], %40 {strides = array<i32>} : memref<2x4x8x16xf32, #tpu.memory_space<vmem>>, vector<1x1x8x16xf32>,
    %cst_29 = arith.constant dense<0.000000e+00> : vector<8x8xf32>
    %41 = tpu.matmul %37, %26, %cst_29 {dimension_numbers = #tpu.dot_dimension_numbers<[1], [0], [0], [1], [0, 0, 1, 1], [], []>} : vector<8x16xf32>, vector<16x8xf32>, vector<8x8xf32> -> vector<8x8xf32>
    %c0_30 = arith.constant 0 : index
    %c0_31 = arith.constant 0 : index
    %c0_32 = arith.constant 0 : index
    %42 = vector.load %arg10[%c0_30, %c0_31, %c0_32] : memref<2x8x32xf32, #tpu.memory_space<vmem>>, vector<1x8x8xf32>
    %43 = vector.shape_cast %42 : vector<1x8x8xf32> to vector<8x8xf32>
    %44 = vector.shape_cast %41 : vector<8x8xf32> to vector<1x8x8xf32>
    tpu.vector_store %arg10[%c0_30, %c0_31, %c0_32], %44 {strides = array<i32>} : memref<2x8x32xf32, #tpu.memory_space<vmem>>, vector<1x8x8xf32>,
    %45 = vector.extract_strided_slice %21 {offsets = [0, 4], sizes = [8, 4], strides = [1, 1]} : vector<8x16xf32> to vector<8x4xf32>
    %46 = vector.extract_strided_slice %22 {offsets = [0, 4], sizes = [16, 4], strides = [1, 1]} : vector<16x16xf32> to vector<16x4xf32>
    %47 = vector.extract_strided_slice %23 {offsets = [0, 8], sizes = [16, 8], strides = [1, 1]} : vector<16x32xf32> to vector<16x8xf32>
    %cst_33 = arith.constant dense<0.000000e+00> : vector<8x16xf32>
    %48 = tpu.matmul %45, %46, %cst_33 {dimension_numbers = #tpu.dot_dimension_numbers<[1], [1], [0], [0], [0, 0, 1, 0], [], []>} : vector<8x4xf32>, vector<16x4xf32>, vector<8x16xf32> -> vector<8x16xf32>
    %cst_34 = arith.constant dense<0xFF800000> : vector<8xf32>
    %49 = vector.multi_reduction <maximumf>, %48, %cst_34 [1] : vector<8x16xf32> to vector<8xf32>
    %50 = vector.shape_cast %49 : vector<8xf32> to vector<8x1xf32>
    %51 = vector.broadcast %50 : vector<8x1xf32> to vector<8x16xf32>
    %52 = arith.subf %48, %51 : vector<8x16xf32>
    %53 = math.exp %52 : vector<8x16xf32>
    %cst_35 = arith.constant dense<0.000000e+00> : vector<8xf32>
    %54 = vector.multi_reduction <add>, %53, %cst_35 [1] : vector<8x16xf32> to vector<8xf32>
    %55 = vector.shape_cast %54 : vector<8xf32> to vector<8x1xf32>
    %56 = tpu.reciprocal %55 {approx = true} : vector<8x1xf32> -> vector<8x1xf32>
    %57 = vector.broadcast %56 : vector<8x1xf32> to vector<8x16xf32>
    %58 = arith.mulf %53, %57 : vector<8x16xf32>
    %c0_36 = arith.constant 0 : index
    %c1 = arith.constant 1 : index
    %c0_37 = arith.constant 0 : index
    %c0_38 = arith.constant 0 : index
    %59 = vector.load %arg11[%c0_36, %c1, %c0_37, %c0_38] : memref<2x4x8x16xf32, #tpu.memory_space<vmem>>, vector<1x1x8x16xf32>
    %60 = vector.shape_cast %59 : vector<1x1x8x16xf32> to vector<8x16xf32>
    %61 = vector.shape_cast %58 : vector<8x16xf32> to vector<1x1x8x16xf32>
    tpu.vector_store %arg11[%c0_36, %c1, %c0_37, %c0_38], %61 {strides = array<i32>} : memref<2x4x8x16xf32, #tpu.memory_space<vmem>>, vector<1x1x8x16xf32>,
    %cst_39 = arith.constant dense<0.000000e+00> : vector<8x8xf32>
    %62 = tpu.matmul %58, %47, %cst_39 {dimension_numbers = #tpu.dot_dimension_numbers<[1], [0], [0], [1], [0, 0, 1, 1], [], []>} : vector<8x16xf32>, vector<16x8xf32>, vector<8x8xf32> -> vector<8x8xf32>
    %c0_40 = arith.constant 0 : index
    %c0_41 = arith.constant 0 : index
    %c8 = arith.constant 8 : index
    %63 = vector.load %arg10[%c0_40, %c0_41, %c8] : memref<2x8x32xf32, #tpu.memory_space<vmem>>, vector<1x8x8xf32>
    %64 = vector.shape_cast %63 : vector<1x8x8xf32> to vector<8x8xf32>
    %65 = vector.shape_cast %62 : vector<8x8xf32> to vector<1x8x8xf32>
    tpu.vector_store %arg10[%c0_40, %c0_41, %c8], %65 {strides = array<i32>} : memref<2x8x32xf32, #tpu.memory_space<vmem>>, vector<1x8x8xf32>,
    %66 = vector.extract_strided_slice %21 {offsets = [0, 8], sizes = [8, 4], strides = [1, 1]} : vector<8x16xf32> to vector<8x4xf32>
    %67 = vector.extract_strided_slice %22 {offsets = [0, 8], sizes = [16, 4], strides = [1, 1]} : vector<16x16xf32> to vector<16x4xf32>
    %68 = vector.extract_strided_slice %23 {offsets = [0, 16], sizes = [16, 8], strides = [1, 1]} : vector<16x32xf32> to vector<16x8xf32>
    %cst_42 = arith.constant dense<0.000000e+00> : vector<8x16xf32>
    %69 = tpu.matmul %66, %67, %cst_42 {dimension_numbers = #tpu.dot_dimension_numbers<[1], [1], [0], [0], [0, 0, 1, 0], [], []>} : vector<8x4xf32>, vector<16x4xf32>, vector<8x16xf32> -> vector<8x16xf32>
    %cst_43 = arith.constant dense<0xFF800000> : vector<8xf32>
    %70 = vector.multi_reduction <maximumf>, %69, %cst_43 [1] : vector<8x16xf32> to vector<8xf32>
    %71 = vector.shape_cast %70 : vector<8xf32> to vector<8x1xf32>
    %72 = vector.broadcast %71 : vector<8x1xf32> to vector<8x16xf32>
    %73 = arith.subf %69, %72 : vector<8x16xf32>
    %74 = math.exp %73 : vector<8x16xf32>
    %cst_44 = arith.constant dense<0.000000e+00> : vector<8xf32>
    %75 = vector.multi_reduction <add>, %74, %cst_44 [1] : vector<8x16xf32> to vector<8xf32>
    %76 = vector.shape_cast %75 : vector<8xf32> to vector<8x1xf32>
    %77 = tpu.reciprocal %76 {approx = true} : vector<8x1xf32> -> vector<8x1xf32>
    %78 = vector.broadcast %77 : vector<8x1xf32> to vector<8x16xf32>
    %79 = arith.mulf %74, %78 : vector<8x16xf32>
    %c0_45 = arith.constant 0 : index
    %c2 = arith.constant 2 : index
    %c0_46 = arith.constant 0 : index
    %c0_47 = arith.constant 0 : index
    %80 = vector.load %arg11[%c0_45, %c2, %c0_46, %c0_47] : memref<2x4x8x16xf32, #tpu.memory_space<vmem>>, vector<1x1x8x16xf32>
    %81 = vector.shape_cast %80 : vector<1x1x8x16xf32> to vector<8x16xf32>
    %82 = vector.shape_cast %79 : vector<8x16xf32> to vector<1x1x8x16xf32>
    tpu.vector_store %arg11[%c0_45, %c2, %c0_46, %c0_47], %82 {strides = array<i32>} : memref<2x4x8x16xf32, #tpu.memory_space<vmem>>, vector<1x1x8x16xf32>,
    %cst_48 = arith.constant dense<0.000000e+00> : vector<8x8xf32>
    %83 = tpu.matmul %79, %68, %cst_48 {dimension_numbers = #tpu.dot_dimension_numbers<[1], [0], [0], [1], [0, 0, 1, 1], [], []>} : vector<8x16xf32>, vector<16x8xf32>, vector<8x8xf32> -> vector<8x8xf32>
    %c0_49 = arith.constant 0 : index
    %c0_50 = arith.constant 0 : index
    %c16 = arith.constant 16 : index
    %84 = vector.load %arg10[%c0_49, %c0_50, %c16] : memref<2x8x32xf32, #tpu.memory_space<vmem>>, vector<1x8x8xf32>
    %85 = vector.shape_cast %84 : vector<1x8x8xf32> to vector<8x8xf32>
    %86 = vector.shape_cast %83 : vector<8x8xf32> to vector<1x8x8xf32>
    tpu.vector_store %arg10[%c0_49, %c0_50, %c16], %86 {strides = array<i32>} : memref<2x8x32xf32, #tpu.memory_space<vmem>>, vector<1x8x8xf32>,
    %87 = vector.extract_strided_slice %21 {offsets = [0, 12], sizes = [8, 4], strides = [1, 1]} : vector<8x16xf32> to vector<8x4xf32>
    %88 = vector.extract_strided_slice %22 {offsets = [0, 12], sizes = [16, 4], strides = [1, 1]} : vector<16x16xf32> to vector<16x4xf32>
    %89 = vector.extract_strided_slice %23 {offsets = [0, 24], sizes = [16, 8], strides = [1, 1]} : vector<16x32xf32> to vector<16x8xf32>
    %cst_51 = arith.constant dense<0.000000e+00> : vector<8x16xf32>
    %90 = tpu.matmul %87, %88, %cst_51 {dimension_numbers = #tpu.dot_dimension_numbers<[1], [1], [0], [0], [0, 0, 1, 0], [], []>} : vector<8x4xf32>, vector<16x4xf32>, vector<8x16xf32> -> vector<8x16xf32>
    %cst_52 = arith.constant dense<0xFF800000> : vector<8xf32>
    %91 = vector.multi_reduction <maximumf>, %90, %cst_52 [1] : vector<8x16xf32> to vector<8xf32>
    %92 = vector.shape_cast %91 : vector<8xf32> to vector<8x1xf32>
    %93 = vector.broadcast %92 : vector<8x1xf32> to vector<8x16xf32>
    %94 = arith.subf %90, %93 : vector<8x16xf32>
    %95 = math.exp %94 : vector<8x16xf32>
    %cst_53 = arith.constant dense<0.000000e+00> : vector<8xf32>
    %96 = vector.multi_reduction <add>, %95, %cst_53 [1] : vector<8x16xf32> to vector<8xf32>
    %97 = vector.shape_cast %96 : vector<8xf32> to vector<8x1xf32>
    %98 = tpu.reciprocal %97 {approx = true} : vector<8x1xf32> -> vector<8x1xf32>
    %99 = vector.broadcast %98 : vector<8x1xf32> to vector<8x16xf32>
    %100 = arith.mulf %95, %99 : vector<8x16xf32>
    %c0_54 = arith.constant 0 : index
    %c3 = arith.constant 3 : index
    %c0_55 = arith.constant 0 : index
    %c0_56 = arith.constant 0 : index
    %101 = vector.load %arg11[%c0_54, %c3, %c0_55, %c0_56] : memref<2x4x8x16xf32, #tpu.memory_space<vmem>>, vector<1x1x8x16xf32>
    %102 = vector.shape_cast %101 : vector<1x1x8x16xf32> to vector<8x16xf32>
    %103 = vector.shape_cast %100 : vector<8x16xf32> to vector<1x1x8x16xf32>
    tpu.vector_store %arg11[%c0_54, %c3, %c0_55, %c0_56], %103 {strides = array<i32>} : memref<2x4x8x16xf32, #tpu.memory_space<vmem>>, vector<1x1x8x16xf32>,
    %cst_57 = arith.constant dense<0.000000e+00> : vector<8x8xf32>
    %104 = tpu.matmul %100, %89, %cst_57 {dimension_numbers = #tpu.dot_dimension_numbers<[1], [0], [0], [1], [0, 0, 1, 1], [], []>} : vector<8x16xf32>, vector<16x8xf32>, vector<8x8xf32> -> vector<8x8xf32>
    %c0_58 = arith.constant 0 : index
    %c0_59 = arith.constant 0 : index
    %c24 = arith.constant 24 : index
    %105 = vector.load %arg10[%c0_58, %c0_59, %c24] : memref<2x8x32xf32, #tpu.memory_space<vmem>>, vector<1x8x8xf32>
    %106 = vector.shape_cast %105 : vector<1x8x8xf32> to vector<8x8xf32>
    %107 = vector.shape_cast %104 : vector<8x8xf32> to vector<1x8x8xf32>
    tpu.vector_store %arg10[%c0_58, %c0_59, %c24], %107 {strides = array<i32>} : memref<2x8x32xf32, #tpu.memory_space<vmem>>, vector<1x8x8xf32>,
    %108 = vector.extract_strided_slice %10 {offsets = [8, 0], sizes = [8, 16], strides = [1, 1]} : vector<16x16xf32> to vector<8x16xf32>
    %109 = vector.extract_strided_slice %15 {offsets = [16, 0], sizes = [16, 16], strides = [1, 1]} : vector<32x16xf32> to vector<16x16xf32>
    %110 = vector.extract_strided_slice %20 {offsets = [16, 0], sizes = [16, 32], strides = [1, 1]} : vector<32x32xf32> to vector<16x32xf32>
    %111 = vector.extract_strided_slice %108 {offsets = [0, 0], sizes = [8, 4], strides = [1, 1]} : vector<8x16xf32> to vector<8x4xf32>
    %112 = vector.extract_strided_slice %109 {offsets = [0, 0], sizes = [16, 4], strides = [1, 1]} : vector<16x16xf32> to vector<16x4xf32>
    %113 = vector.extract_strided_slice %110 {offsets = [0, 0], sizes = [16, 8], strides = [1, 1]} : vector<16x32xf32> to vector<16x8xf32>
    %cst_60 = arith.constant dense<0.000000e+00> : vector<8x16xf32>
    %114 = tpu.matmul %111, %112, %cst_60 {dimension_numbers = #tpu.dot_dimension_numbers<[1], [1], [0], [0], [0, 0, 1, 0], [], []>} : vector<8x4xf32>, vector<16x4xf32>, vector<8x16xf32> -> vector<8x16xf32>
    %cst_61 = arith.constant dense<0xFF800000> : vector<8xf32>
    %115 = vector.multi_reduction <maximumf>, %114, %cst_61 [1] : vector<8x16xf32> to vector<8xf32>
    %116 = vector.shape_cast %115 : vector<8xf32> to vector<8x1xf32>
    %117 = vector.broadcast %116 : vector<8x1xf32> to vector<8x16xf32>
    %118 = arith.subf %114, %117 : vector<8x16xf32>
    %119 = math.exp %118 : vector<8x16xf32>
    %cst_62 = arith.constant dense<0.000000e+00> : vector<8xf32>
    %120 = vector.multi_reduction <add>, %119, %cst_62 [1] : vector<8x16xf32> to vector<8xf32>
    %121 = vector.shape_cast %120 : vector<8xf32> to vector<8x1xf32>
    %122 = tpu.reciprocal %121 {approx = true} : vector<8x1xf32> -> vector<8x1xf32>
    %123 = vector.broadcast %122 : vector<8x1xf32> to vector<8x16xf32>
    %124 = arith.mulf %119, %123 : vector<8x16xf32>
    %c1_63 = arith.constant 1 : index
    %c0_64 = arith.constant 0 : index
    %c0_65 = arith.constant 0 : index
    %c0_66 = arith.constant 0 : index
    %125 = vector.load %arg11[%c1_63, %c0_64, %c0_65, %c0_66] : memref<2x4x8x16xf32, #tpu.memory_space<vmem>>, vector<1x1x8x16xf32>
    %126 = vector.shape_cast %125 : vector<1x1x8x16xf32> to vector<8x16xf32>
    %127 = vector.shape_cast %124 : vector<8x16xf32> to vector<1x1x8x16xf32>
    tpu.vector_store %arg11[%c1_63, %c0_64, %c0_65, %c0_66], %127 {strides = array<i32>} : memref<2x4x8x16xf32, #tpu.memory_space<vmem>>, vector<1x1x8x16xf32>,
    %cst_67 = arith.constant dense<0.000000e+00> : vector<8x8xf32>
    %128 = tpu.matmul %124, %113, %cst_67 {dimension_numbers = #tpu.dot_dimension_numbers<[1], [0], [0], [1], [0, 0, 1, 1], [], []>} : vector<8x16xf32>, vector<16x8xf32>, vector<8x8xf32> -> vector<8x8xf32>
    %c1_68 = arith.constant 1 : index
    %c0_69 = arith.constant 0 : index
    %c0_70 = arith.constant 0 : index
    %129 = vector.load %arg10[%c1_68, %c0_69, %c0_70] : memref<2x8x32xf32, #tpu.memory_space<vmem>>, vector<1x8x8xf32>
    %130 = vector.shape_cast %129 : vector<1x8x8xf32> to vector<8x8xf32>
    %131 = vector.shape_cast %128 : vector<8x8xf32> to vector<1x8x8xf32>
    tpu.vector_store %arg10[%c1_68, %c0_69, %c0_70], %131 {strides = array<i32>} : memref<2x8x32xf32, #tpu.memory_space<vmem>>, vector<1x8x8xf32>,
    %132 = vector.extract_strided_slice %108 {offsets = [0, 4], sizes = [8, 4], strides = [1, 1]} : vector<8x16xf32> to vector<8x4xf32>
    %133 = vector.extract_strided_slice %109 {offsets = [0, 4], sizes = [16, 4], strides = [1, 1]} : vector<16x16xf32> to vector<16x4xf32>
    %134 = vector.extract_strided_slice %110 {offsets = [0, 8], sizes = [16, 8], strides = [1, 1]} : vector<16x32xf32> to vector<16x8xf32>
    %cst_71 = arith.constant dense<0.000000e+00> : vector<8x16xf32>
    %135 = tpu.matmul %132, %133, %cst_71 {dimension_numbers = #tpu.dot_dimension_numbers<[1], [1], [0], [0], [0, 0, 1, 0], [], []>} : vector<8x4xf32>, vector<16x4xf32>, vector<8x16xf32> -> vector<8x16xf32>
    %cst_72 = arith.constant dense<0xFF800000> : vector<8xf32>
    %136 = vector.multi_reduction <maximumf>, %135, %cst_72 [1] : vector<8x16xf32> to vector<8xf32>
    %137 = vector.shape_cast %136 : vector<8xf32> to vector<8x1xf32>
    %138 = vector.broadcast %137 : vector<8x1xf32> to vector<8x16xf32>
    %139 = arith.subf %135, %138 : vector<8x16xf32>
    %140 = math.exp %139 : vector<8x16xf32>
    %cst_73 = arith.constant dense<0.000000e+00> : vector<8xf32>
    %141 = vector.multi_reduction <add>, %140, %cst_73 [1] : vector<8x16xf32> to vector<8xf32>
    %142 = vector.shape_cast %141 : vector<8xf32> to vector<8x1xf32>
    %143 = tpu.reciprocal %142 {approx = true} : vector<8x1xf32> -> vector<8x1xf32>
    %144 = vector.broadcast %143 : vector<8x1xf32> to vector<8x16xf32>
    %145 = arith.mulf %140, %144 : vector<8x16xf32>
    %c1_74 = arith.constant 1 : index
    %c1_75 = arith.constant 1 : index
    %c0_76 = arith.constant 0 : index
    %c0_77 = arith.constant 0 : index
    %146 = vector.load %arg11[%c1_74, %c1_75, %c0_76, %c0_77] : memref<2x4x8x16xf32, #tpu.memory_space<vmem>>, vector<1x1x8x16xf32>
    %147 = vector.shape_cast %146 : vector<1x1x8x16xf32> to vector<8x16xf32>
    %148 = vector.shape_cast %145 : vector<8x16xf32> to vector<1x1x8x16xf32>
    tpu.vector_store %arg11[%c1_74, %c1_75, %c0_76, %c0_77], %148 {strides = array<i32>} : memref<2x4x8x16xf32, #tpu.memory_space<vmem>>, vector<1x1x8x16xf32>,
    %cst_78 = arith.constant dense<0.000000e+00> : vector<8x8xf32>
    %149 = tpu.matmul %145, %134, %cst_78 {dimension_numbers = #tpu.dot_dimension_numbers<[1], [0], [0], [1], [0, 0, 1, 1], [], []>} : vector<8x16xf32>, vector<16x8xf32>, vector<8x8xf32> -> vector<8x8xf32>
    %c1_79 = arith.constant 1 : index
    %c0_80 = arith.constant 0 : index
    %c8_81 = arith.constant 8 : index
    %150 = vector.load %arg10[%c1_79, %c0_80, %c8_81] : memref<2x8x32xf32, #tpu.memory_space<vmem>>, vector<1x8x8xf32>
    %151 = vector.shape_cast %150 : vector<1x8x8xf32> to vector<8x8xf32>
    %152 = vector.shape_cast %149 : vector<8x8xf32> to vector<1x8x8xf32>
    tpu.vector_store %arg10[%c1_79, %c0_80, %c8_81], %152 {strides = array<i32>} : memref<2x8x32xf32, #tpu.memory_space<vmem>>, vector<1x8x8xf32>,
    %153 = vector.extract_strided_slice %108 {offsets = [0, 8], sizes = [8, 4], strides = [1, 1]} : vector<8x16xf32> to vector<8x4xf32>
    %154 = vector.extract_strided_slice %109 {offsets = [0, 8], sizes = [16, 4], strides = [1, 1]} : vector<16x16xf32> to vector<16x4xf32>
    %155 = vector.extract_strided_slice %110 {offsets = [0, 16], sizes = [16, 8], strides = [1, 1]} : vector<16x32xf32> to vector<16x8xf32>
    %cst_82 = arith.constant dense<0.000000e+00> : vector<8x16xf32>
    %156 = tpu.matmul %153, %154, %cst_82 {dimension_numbers = #tpu.dot_dimension_numbers<[1], [1], [0], [0], [0, 0, 1, 0], [], []>} : vector<8x4xf32>, vector<16x4xf32>, vector<8x16xf32> -> vector<8x16xf32>
    %cst_83 = arith.constant dense<0xFF800000> : vector<8xf32>
    %157 = vector.multi_reduction <maximumf>, %156, %cst_83 [1] : vector<8x16xf32> to vector<8xf32>
    %158 = vector.shape_cast %157 : vector<8xf32> to vector<8x1xf32>
    %159 = vector.broadcast %158 : vector<8x1xf32> to vector<8x16xf32>
    %160 = arith.subf %156, %159 : vector<8x16xf32>
    %161 = math.exp %160 : vector<8x16xf32>
    %cst_84 = arith.constant dense<0.000000e+00> : vector<8xf32>
    %162 = vector.multi_reduction <add>, %161, %cst_84 [1] : vector<8x16xf32> to vector<8xf32>
    %163 = vector.shape_cast %162 : vector<8xf32> to vector<8x1xf32>
    %164 = tpu.reciprocal %163 {approx = true} : vector<8x1xf32> -> vector<8x1xf32>
    %165 = vector.broadcast %164 : vector<8x1xf32> to vector<8x16xf32>
    %166 = arith.mulf %161, %165 : vector<8x16xf32>
    %c1_85 = arith.constant 1 : index
    %c2_86 = arith.constant 2 : index
    %c0_87 = arith.constant 0 : index
    %c0_88 = arith.constant 0 : index
    %167 = vector.load %arg11[%c1_85, %c2_86, %c0_87, %c0_88] : memref<2x4x8x16xf32, #tpu.memory_space<vmem>>, vector<1x1x8x16xf32>
    %168 = vector.shape_cast %167 : vector<1x1x8x16xf32> to vector<8x16xf32>
    %169 = vector.shape_cast %166 : vector<8x16xf32> to vector<1x1x8x16xf32>
    tpu.vector_store %arg11[%c1_85, %c2_86, %c0_87, %c0_88], %169 {strides = array<i32>} : memref<2x4x8x16xf32, #tpu.memory_space<vmem>>, vector<1x1x8x16xf32>,
    %cst_89 = arith.constant dense<0.000000e+00> : vector<8x8xf32>
    %170 = tpu.matmul %166, %155, %cst_89 {dimension_numbers = #tpu.dot_dimension_numbers<[1], [0], [0], [1], [0, 0, 1, 1], [], []>} : vector<8x16xf32>, vector<16x8xf32>, vector<8x8xf32> -> vector<8x8xf32>
    %c1_90 = arith.constant 1 : index
    %c0_91 = arith.constant 0 : index
    %c16_92 = arith.constant 16 : index
    %171 = vector.load %arg10[%c1_90, %c0_91, %c16_92] : memref<2x8x32xf32, #tpu.memory_space<vmem>>, vector<1x8x8xf32>
    %172 = vector.shape_cast %171 : vector<1x8x8xf32> to vector<8x8xf32>
    %173 = vector.shape_cast %170 : vector<8x8xf32> to vector<1x8x8xf32>
    tpu.vector_store %arg10[%c1_90, %c0_91, %c16_92], %173 {strides = array<i32>} : memref<2x8x32xf32, #tpu.memory_space<vmem>>, vector<1x8x8xf32>,
    %174 = vector.extract_strided_slice %108 {offsets = [0, 12], sizes = [8, 4], strides = [1, 1]} : vector<8x16xf32> to vector<8x4xf32>
    %175 = vector.extract_strided_slice %109 {offsets = [0, 12], sizes = [16, 4], strides = [1, 1]} : vector<16x16xf32> to vector<16x4xf32>
    %176 = vector.extract_strided_slice %110 {offsets = [0, 24], sizes = [16, 8], strides = [1, 1]} : vector<16x32xf32> to vector<16x8xf32>
    %cst_93 = arith.constant dense<0.000000e+00> : vector<8x16xf32>
    %177 = tpu.matmul %174, %175, %cst_93 {dimension_numbers = #tpu.dot_dimension_numbers<[1], [1], [0], [0], [0, 0, 1, 0], [], []>} : vector<8x4xf32>, vector<16x4xf32>, vector<8x16xf32> -> vector<8x16xf32>
    %cst_94 = arith.constant dense<0xFF800000> : vector<8xf32>
    %178 = vector.multi_reduction <maximumf>, %177, %cst_94 [1] : vector<8x16xf32> to vector<8xf32>
    %179 = vector.shape_cast %178 : vector<8xf32> to vector<8x1xf32>
    %180 = vector.broadcast %179 : vector<8x1xf32> to vector<8x16xf32>
    %181 = arith.subf %177, %180 : vector<8x16xf32>
    %182 = math.exp %181 : vector<8x16xf32>
    %cst_95 = arith.constant dense<0.000000e+00> : vector<8xf32>
    %183 = vector.multi_reduction <add>, %182, %cst_95 [1] : vector<8x16xf32> to vector<8xf32>
    %184 = vector.shape_cast %183 : vector<8xf32> to vector<8x1xf32>
    %185 = tpu.reciprocal %184 {approx = true} : vector<8x1xf32> -> vector<8x1xf32>
    %186 = vector.broadcast %185 : vector<8x1xf32> to vector<8x16xf32>
    %187 = arith.mulf %182, %186 : vector<8x16xf32>
    %c1_96 = arith.constant 1 : index
    %c3_97 = arith.constant 3 : index
    %c0_98 = arith.constant 0 : index
    %c0_99 = arith.constant 0 : index
    %188 = vector.load %arg11[%c1_96, %c3_97, %c0_98, %c0_99] : memref<2x4x8x16xf32, #tpu.memory_space<vmem>>, vector<1x1x8x16xf32>
    %189 = vector.shape_cast %188 : vector<1x1x8x16xf32> to vector<8x16xf32>
    %190 = vector.shape_cast %187 : vector<8x16xf32> to vector<1x1x8x16xf32>
    tpu.vector_store %arg11[%c1_96, %c3_97, %c0_98, %c0_99], %190 {strides = array<i32>} : memref<2x4x8x16xf32, #tpu.memory_space<vmem>>, vector<1x1x8x16xf32>,
    %cst_100 = arith.constant dense<0.000000e+00> : vector<8x8xf32>
    %191 = tpu.matmul %187, %176, %cst_100 {dimension_numbers = #tpu.dot_dimension_numbers<[1], [0], [0], [1], [0, 0, 1, 1], [], []>} : vector<8x16xf32>, vector<16x8xf32>, vector<8x8xf32> -> vector<8x8xf32>
    %c1_101 = arith.constant 1 : index
    %c0_102 = arith.constant 0 : index
    %c24_103 = arith.constant 24 : index
    %192 = vector.load %arg10[%c1_101, %c0_102, %c24_103] : memref<2x8x32xf32, #tpu.memory_space<vmem>>, vector<1x8x8xf32>
    %193 = vector.shape_cast %192 : vector<1x8x8xf32> to vector<8x8xf32>
    %194 = vector.shape_cast %191 : vector<8x8xf32> to vector<1x8x8xf32>
    tpu.vector_store %arg10[%c1_101, %c0_102, %c24_103], %194 {strides = array<i32>} : memref<2x8x32xf32, #tpu.memory_space<vmem>>, vector<1x8x8xf32>,
    return
  }
  func.func @transform_0(%arg0: i32) -> (i32, i32, i32) {
    %c0_i32 = arith.constant 0 : i32
    %c0_i32_0 = arith.constant 0 : i32
    %c0_i32_1 = arith.constant 0 : i32
    return %arg0, %c0_i32, %c0_i32_0 : i32, i32, i32
  }
  func.func @transform_1(%arg0: i32) -> (i32, i32, i32) {
    %c0_i32 = arith.constant 0 : i32
    %c0_i32_0 = arith.constant 0 : i32
    %c0_i32_1 = arith.constant 0 : i32
    return %arg0, %c0_i32, %c0_i32_0 : i32, i32, i32
  }
  func.func @transform_2(%arg0: i32) -> (i32, i32, i32) {
    %c0_i32 = arith.constant 0 : i32
    %c0_i32_0 = arith.constant 0 : i32
    %c0_i32_1 = arith.constant 0 : i32
    return %arg0, %c0_i32, %c0_i32_0 : i32, i32, i32
  }
  func.func @transform_3(%arg0: i32) -> (i32, i32) {
    %c0_i32 = arith.constant 0 : i32
    %c0_i32_0 = arith.constant 0 : i32
    %c0_i32_1 = arith.constant 0 : i32
    return %c0_i32, %c0_i32_0 : i32, i32
  }
  func.func @transform_4(%arg0: i32) -> (i32, i32) {
    %c0_i32 = arith.constant 0 : i32
    %c0_i32_0 = arith.constant 0 : i32
    %c0_i32_1 = arith.constant 0 : i32
    return %c0_i32, %c0_i32_0 : i32, i32
  }
  func.func @transform_5(%arg0: i32) -> (i32, i32) {
    %c0_i32 = arith.constant 0 : i32
    %c0_i32_0 = arith.constant 0 : i32
    %c0_i32_1 = arith.constant 0 : i32
    return %c0_i32, %c0_i32_0 : i32, i32
  }
  func.func @transform_6(%arg0: i32) -> (i32, i32) {
    %c0_i32 = arith.constant 0 : i32
    %c0_i32_0 = arith.constant 0 : i32
    %c0_i32_1 = arith.constant 0 : i32
    return %c0_i32, %c0_i32_0 : i32, i32
  }
  func.func @transform_7(%arg0: i32) -> (i32, i32) {
    %c0_i32 = arith.constant 0 : i32
    %c0_i32_0 = arith.constant 0 : i32
    %c0_i32_1 = arith.constant 0 : i32
    return %c0_i32, %c0_i32_0 : i32, i32
  }
  func.func @transform_8(%arg0: i32) -> (i32, i32) {
    %c0_i32 = arith.constant 0 : i32
    %c0_i32_0 = arith.constant 0 : i32
    %c0_i32_1 = arith.constant 0 : i32
    return %c0_i32, %c0_i32_0 : i32, i32
  }
  func.func @transform_9(%arg0: i32) -> (i32, i32, i32) {
    %c0_i32 = arith.constant 0 : i32
    %c0_i32_0 = arith.constant 0 : i32
    %c0_i32_1 = arith.constant 0 : i32
    return %arg0, %c0_i32, %c0_i32_0 : i32, i32, i32
  }
  func.func @transform_10(%arg0: i32) -> (i32, i32, i32, i32) {
    %c0_i32 = arith.constant 0 : i32
    %c0_i32_0 = arith.constant 0 : i32
    %c0_i32_1 = arith.constant 0 : i32
    %c0_i32_2 = arith.constant 0 : i32
    return %arg0, %c0_i32, %c0_i32_0, %c0_i32_1 : i32, i32, i32, i32
  }
}

</mosaic_0001>

<bundles_post_ra>
// kernel: tpu_custom_call.1
= control target key start
LH: loop header
LB: loop body
LE: loop exit
PB: predicated region body
PF: predicated region fallthrough
CT: control target
= control target key end

     0   :  { %s3916_s0 = inlined_call_operand.hbm [shape: f32[4,8,16], index: 0, kind: input, shape index: {}]   ;;  %s3917_s1 = inlined_call_operand.hbm [shape: f32[4,16,16], index: 1, kind: input, shape index: {}]   ;;  %s3918_s2 = inlined_call_operand.hbm [shape: f32[4,16,32], index: 2, kind: input, shape index: {}]   ;;  %s3919_s3 = inlined_call_operand.hbm [shape: f32[16,16], index: 3, kind: input, shape index: {}]   ;;  %s3920_s4 = inlined_call_operand.vmem [shape: f32[1,16], index: 4, kind: input, shape index: {}]   ;;  %s3921_s5 = inlined_call_operand.hbm [shape: f32[16,16], index: 5, kind: input, shape index: {}]   ;;  %s3922_s6 = inlined_call_operand.vmem [shape: f32[1,16], index: 6, kind: input, shape index: {}]   ;;  %s3923_s7 = inlined_call_operand.hbm [shape: f32[32,32], index: 7, kind: input, shape index: {}]   ;;  %s3924_s8 = inlined_call_operand.vmem [shape: f32[1,32], index: 8, kind: input, shape index: {}]   ;;  %s3925_s9 = inlined_call_operand.hbm [shape: f32[4,8,32], index: 9, kind: output, shape index: {0}]   ;;  %s3926_s10 = inlined_call_operand.hbm [shape: f32[4,4,8,16], index: 10, kind: output, shape index: {1}]  }
   0x1   :  { %3949 = sst [smem:[#allocation28_spill]] %s3917_s1 }
   0x2   :  { %3950 = sst [smem:[#allocation29_spill]] %s3919_s3 }
   0x3   :  { %3951 = sst [smem:[#allocation30_spill]] %s3922_s6 }
   0x4   :  { %3952 = sst [smem:[#allocation31_spill]] %s3924_s8 }
   0x5   :  { %3953 = sst [smem:[#allocation32_spill]] %s3925_s9 }
   0x6   :  { %3954 = sst [smem:[#allocation33_spill]] %s3926_s10 }
   0x7   :  { %16 = vsyncpa [#allocation3], 0 }
   0x8   :  { %18 = vsyncpa [#allocation3 + $0x1], 0 }
   0x9   :  { %19 = vsyncpa [#allocation6], 0 }
   0xa   :  { %21 = vsyncpa [#allocation6 + $0x1], 0 }
   0xb   :  { %22 = vsyncpa [#allocation9], 0 }
   0xc   :  { %23 = vsyncpa [#allocation12], 0 }
   0xd   :  { %24 = vsyncpa [#allocation4], 0 }
   0xe   :  { %26 = vsyncpa [#allocation4 + $0x1], 0 }
   0xf   :  { %27 = vsyncpa [#allocation15], 0 }
  0x10   :  { %29 = vsyncpa [#allocation15 + $0x1], 0  ;;  %s3252_s13 = smov 0   ;;  %s3254_s14 = smov 0  }
  0x11   :  { %s3256_s15 = smov 0   ;;  %s3258_s16 = smov 0  }
  0x12 LB: > { %3955 = sst [smem:[#allocation22_spill]] %s3162_s13  ;;  %s3273_s17 = sadd.s32 4294967295, %s3174_s16   ;;  %s3174_s16 = sphi %s3258_s16, %s3994_s16   ;;  %s3170_s15 = sphi %s3256_s15, %s3996_s15   ;;  %s3166_s14 = sphi %s3254_s14, %s3998_s14   ;;  %s3162_s13 = sphi %s3252_s13, %s3997_s13  }
  0x13   : > { %3956 = sst [smem:[#allocation23_spill]] %s3170_s15  ;;  %s2461_s18 = sadd.s32 4294967294, %s3174_s16  }
  0x14   : > { %s3277_s19 = sadd.s32 1, %s3174_s16   ;;  %s42_s20 = sadd.s32 1, %s3170_s15 }
  0x15   : > { %3957 = sst [smem:[#allocation24_spill]] %s3277_s19  ;;  %s39_s21 = ssub.s32 %s3174_s16, %s3277_s19 }
  0x16   : > { %p49_p0 = scmp.ne.s32.totalorder %s3170_s15, %s3166_s14  ;;  %p40_p1 = scmp.eq.s32.totalorder %s39_s21, 0 }
  0x17   : > { %p50_p2 = scmp.eq.s32.totalorder %s3174_s16, 0  ;;  %p55_p3 = scmp.ne.s32.totalorder %s3166_s14, %s3162_s13 }
  0x18   : > { %p3927_p4 = scmp.eq.s32.totalorder %s3273_s17, 0  ;;  %p257_p7 = scmp.eq.s32.totalorder %s3273_s17, 1 }
  0x19   : > { %s3289_s22 = scalar_select %p40_p1, %s3170_s15, %s42_s20  }
  0x1a   : > { %p3291_p5 = por %p50_p2, %p49_p0  ;;  %p3297_p6 = por %p3927_p4, %p55_p3 }
  0x1b   : > { %3958 = sst [smem:[#allocation25_spill]] %s3289_s22  ;;  %p263_p8 = scmp.eq.s32.totalorder %s2461_s18, 1 }
  0x1c   : > { %s3960_s24 = scalar_select %p3297_p6, 1, 0 }
  0x1d   : > { %p2462_p9 = scmp.ge.s32.totalorder %s3174_s16, 1  ;;  %p296_p10 = scmp.lt.s32.totalorder %s3174_s16, 3 }
  0x1e   : > { %p3304_p11 = por %p257_p7, %p49_p0  ;;  %p3308_p12 = por %p263_p8, %p55_p3 }
  0x1f   : > { %p3312_p13 = pnand %p2462_p9, %p296_p10  ;;  %s3176_s28 = smov [#allocation8]  }
  0x20   : > { %s3961_s25 = scalar_select %p3304_p11, 1, 0 }
  0x21   : > { %s3963_s26 = scalar_select %p3308_p12, 1, 0 }
  0x22   : > { %3962 = sst [smem:[#allocation26_spill]] %s3961_s25  ;;  %p2791_p1 = pneg %p3312_p13 }
  0x23   : > { %3964 = sst [smem:[#allocation27_spill]] %s3963_s26  ;;  %s308_s29 = sshll.u32 %s3176_s28, 4  ;;  %s309_s29 = int_to_ptr.vmem [resolvable:$true] %s308_s29 }
  0x24   : > { %s3965_s27 = scalar_select %p3312_p13, 1, 0 }
  0x25   : > { %p3320_p2 = pnand %p2791_p1, %p3927_p4  ;;  %p2821_p3 = scmp.lt.s32.totalorder %s3174_s16, 2 }
  0x26   : > { %s3327_s11 = sand.u32 1, %s3170_s15   ;;  %s378_s12 = sand.u32 1, %s3174_s16  }
  0x27   : > { %s3966_s30 = scalar_select %p3320_p2, 1, 0 }
  0x28   : > { %p3941_p7 = pneg %p3320_p2  ;;  %s2917_s18 = scalar_lea.vmem %s309_s29, 256 }
  0x29   : > { %p2918_p8 = scmp.ne.s32.totalorder %s309_s29, %s2917_s18  ;;  %p2925_p12 = scmp.lt.s32.totalorder %s309_s29, %s309_s29 }
  0x2a   : > { %p2926_p1 = scmp.lt.s32.totalorder %s2917_s18, %s2917_s18 }
  0x2b   : > { %p2920_p9 = pnand %p2918_p8, %p3941_p7 }
  0x2c   : > { %p2927_p4 = por %p2926_p1, %p2925_p12 }
  0x2d   : > { %p2921_p10 = pneg %p2920_p9 }
  0x2f   : > { %p2928_p11 = pnand %p2927_p4, %p2921_p10 }
  0x31   : > { %2931 = shalt.err (!%p2928_p11)
}
  0x32   : > { %s3935_s20 = smov 128   ;;  %s3939_s21 = smov 8  }
  0x33   : > { %s3967_s3 = sld [smem:[#allocation29_spill]]  ;;  %p3347_p4 = pnand %p2821_p3, %p3291_p5 }
  0x34   : > { %s3937_s15 = sshll.u32 %s3327_s11, 5  ;;  %s3938_s19 = sshll.u32 %s3174_s16, 9 }
  0x35   : > { %s3969_s1 = sld [smem:[#allocation28_spill]]  ;;  %s382_s22 = scalar_lea.vmem [#allocation5], %s3937_s15 }
  0x36   : > { %s390_s23 = sshll.u32 %s382_s22, 4  ;;  %p3370_p11 = pneg %p3347_p4  ;;  %s3362_s23 = int_to_ptr.vmem [resolvable:$true] %s390_s23 }
  0x39   : > { %2794 = dma.hbm_to_vmem [thread:$0]  (!%p3320_p2), %s3967_s3, 256, %s309_s29, [#allocation9], %s3935_s20, %s3935_s20, %s3939_s21  }
  0x3a   : > { %s3364_s29 = scalar_lea.sflag [#allocation6], %s378_s12 }
  0x3b   : > { %s3358_s9 = scalar_lea.hbm %s3969_s1, %s3938_s19  ;;  %s2937_s15 = scalar_lea.hbm %s3969_s1, 1024 }
  0x3c   : > { %s2932_s28 = scalar_lea.hbm %s3358_s9, 512  ;;  %p2938_p8 = scmp.lt.s32.totalorder %s3358_s9, %s3969_s1 }
  0x3d   : > { %p2933_p5 = scmp.ne.s32.totalorder %s3358_s9, %s2932_s28  ;;  %p2939_p9 = scmp.lt.s32.totalorder %s2937_s15, %s2932_s28 }
  0x3f   : > { %p2935_p12 = pnand %p3370_p11, %p2933_p5  ;;  %p2940_p10 = por %p2939_p9, %p2938_p8 }
  0x41   : > { %p2936_p3 = pneg %p2935_p12 }
  0x43   : > { %p2941_p1 = pnand %p2940_p10, %p2936_p3 }
  0x45   : > { %2944 = shalt.err (!%p2941_p1)
}
  0x46   : > { %s2945_s12 = scalar_lea.vmem %s3362_s23, 512  ;;  %s3179_s21 = smov [#allocation5]  }
  0x47   : > { %p2946_p0 = scmp.ne.s32.totalorder %s3362_s23, %s2945_s12  ;;  %s2950_s13 = sshll.u32 %s3179_s21, 4  ;;  %s2951_s13 = int_to_ptr.vmem [resolvable:$false] %s2950_s13 }
  0x48   : > { %s2952_s26 = scalar_lea.vmem %s2951_s13, 1024  ;;  %p2953_p7 = scmp.lt.s32.totalorder %s3362_s23, %s2951_s13 }
  0x49   : > { %p2948_p5 = pnand %p2946_p0, %p3370_p11  ;;  %p2954_p6 = scmp.lt.s32.totalorder %s2952_s26, %s2945_s12 }
  0x4b   : > { %p2949_p12 = pneg %p2948_p5  ;;  %p2955_p13 = por %p2954_p6, %p2953_p7 }
  0x4d   : > { %p2956_p2 = pnand %p2955_p13, %p2949_p12 }
  0x4f   : > { %2959 = shalt.err (!%p2956_p2)
}
  0x50   : > { %s3971_s15 = smov 8   ;;  %s3972_s19 = smov 128  }
  0x51   : > { %2807 = dma.hbm_to_vmem [thread:$0]  (!%p3347_p4), %s3358_s9, 512, %s3362_s23, %s3364_s29, %s3972_s19, %s3972_s19, %s3971_s15  }
  0x52   : > { %s3973_s21 = sshll.u32 %s3174_s16, 9  ;;  %s3974_s13 = sshll.u32 %s3327_s11, 5 }
  0x53   : > { %s3401_s12 = scalar_lea.hbm %s3918_s2, %s3973_s21  ;;  %s3405_s26 = scalar_lea.vmem [#allocation7], %s3974_s13 }
  0x54   : > { %s412_s1 = sshll.u32 %s3405_s26, 4  ;;  %s3180_s3 = smov [#allocation10]   ;;  %s3439_s1 = int_to_ptr.vmem [resolvable:$true] %s412_s1 }
  0x55   : > { %s324_s10 = sshll.u32 %s3180_s3, 4  ;;  %s3181_s25 = smov [#allocation11]   ;;  %s325_s10 = int_to_ptr.vmem [resolvable:$true] %s324_s10 }
  0x56   : > { %s340_s8 = sshll.u32 %s3181_s25, 4  ;;  %s2971_s6 = scalar_lea.vmem %s325_s10, 256  ;;  %s341_s8 = int_to_ptr.vmem [resolvable:$true] %s340_s8 }
  0x57   : > { %p2972_p6 = scmp.ne.s32.totalorder %s325_s10, %s2971_s6  ;;  %p3975_p13 = scmp.ne.s32.totalorder %s3966_s30, 0 }
  0x58   : > { %p2979_p3 = scmp.lt.s32.totalorder %s325_s10, %s325_s10  ;;  %p2980_p8 = scmp.lt.s32.totalorder %s2971_s6, %s2971_s6 }
  0x59   : > { %p3976_p2 = pneg %p3975_p13 }
  0x5a   : > { %p2981_p9 = por %p2980_p8, %p2979_p3 }
  0x5b   : > { %p2974_p0 = pnand %p2972_p6, %p3976_p2 }
  0x5d   : > { %p2975_p7 = pneg %p2974_p0 }
  0x5f   : > { %p2982_p10 = pnand %p2981_p9, %p2975_p7 }
  0x61   : > { %2985 = shalt.err (!%p2982_p10)
}
  0x62   : > { %2797 = dma.hbm_to_vmem [thread:$0]  (!%p3975_p13), %s3921_s5, 256, %s325_s10, [#allocation9], %s3972_s19, %s3972_s19, %s3971_s15  }
  0x63   : > { %s2997_s25 = scalar_lea.vmem %s341_s8, 512  ;;  %p3977_p5 = pmov %p3976_p2 }
  0x64   : > { %p2998_p1 = scmp.ne.s32.totalorder %s341_s8, %s2997_s25  ;;  %p3005_p2 = scmp.lt.s32.totalorder %s341_s8, %s341_s8 }
  0x65   : > { %p3006_p0 = scmp.lt.s32.totalorder %s2997_s25, %s2997_s25 }
  0x66   : > { %p3000_p12 = pnand %p2998_p1, %p3977_p5 }
  0x67   : > { %p3007_p7 = por %p3006_p0, %p3005_p2 }
  0x68   : > { %p3001_p6 = pneg %p3000_p12 }
  0x6a   : > { %p3008_p3 = pnand %p3007_p7, %p3001_p6 }
  0x6c   : > { %3011 = shalt.err (!%p3008_p3)
}
  0x6d   : > { %2800 = dma.hbm_to_vmem [thread:$0]  (!%p3975_p13), %s3923_s7, 512, %s341_s8, [#allocation12], %s3972_s19, %s3972_s19, %s3971_s15  }
  0x6e   : > { %s2467_s10 = sshll.u32 %s3327_s11, 4  ;;  %s2552_s21 = sshll.u32 %s3174_s16, 8 }
  0x6f   : > { %s3435_s13 = scalar_lea.hbm %s3916_s0, %s2552_s21  ;;  %s361_s30 = scalar_lea.vmem [#allocation2], %s2467_s10 }
  0x70   : > { %s368_s3 = sshll.u32 %s361_s30, 4  ;;  %s358_s9 = scalar_lea.sflag [#allocation3], %s3327_s11  ;;  %s3441_s3 = int_to_ptr.vmem [resolvable:$true] %s368_s3 }
  0x71   : > { %s3012_s25 = scalar_lea.hbm %s3435_s13, 256  ;;  %s3017_s23 = scalar_lea.hbm %s3916_s0, 512 }
  0x72   : > { %p3013_p13 = scmp.ne.s32.totalorder %s3435_s13, %s3012_s25  ;;  %p3018_p10 = scmp.lt.s32.totalorder %s3435_s13, %s3916_s0 }
  0x73   : > { %p3019_p1 = scmp.lt.s32.totalorder %s3017_s23, %s3012_s25 }
  0x74   : > { %p3015_p8 = pnand %p3013_p13, %p3370_p11 }
  0x75   : > { %p3020_p5 = por %p3019_p1, %p3018_p10 }
  0x76   : > { %p3016_p9 = pneg %p3015_p8 }
  0x78   : > { %p3021_p12 = pnand %p3020_p5, %p3016_p9 }
  0x7a   : > { %3024 = shalt.err (!%p3021_p12)
}
  0x7b   : > { %s3025_s11 = scalar_lea.vmem %s3441_s3, 256  ;;  %s3182_s10 = smov [#allocation2]  }
  0x7c   : > { %p3026_p6 = scmp.ne.s32.totalorder %s3441_s3, %s3025_s11  ;;  %s3030_s28 = sshll.u32 %s3182_s10, 4  ;;  %s3031_s28 = int_to_ptr.vmem [resolvable:$false] %s3030_s28 }
  0x7d   : > { %s3032_s22 = scalar_lea.vmem %s3031_s28, 512  ;;  %p3033_p7 = scmp.lt.s32.totalorder %s3441_s3, %s3031_s28 }
  0x7e   : > { %p3028_p2 = pnand %p3026_p6, %p3370_p11  ;;  %p3034_p3 = scmp.lt.s32.totalorder %s3032_s22, %s3025_s11 }
  0x80   : > { %p3029_p0 = pneg %p3028_p2  ;;  %p3035_p13 = por %p3034_p3, %p3033_p7 }
  0x82   : > { %p3036_p8 = pnand %p3035_p13, %p3029_p0 }
  0x84   : > { %3039 = shalt.err (!%p3036_p8)
}
  0x85   : > { %2804 = dma.hbm_to_vmem [thread:$0]  (!%p3347_p4), %s3435_s13, 256, %s3441_s3, %s358_s9, %s3972_s19, %s3972_s19, %s3971_s15  }
  0x86   : > { %s3040_s30 = scalar_lea.hbm %s3401_s12, 512  ;;  %s3045_s6 = scalar_lea.hbm %s3918_s2, 1024 }
  0x87   : > { %p3041_p9 = scmp.ne.s32.totalorder %s3401_s12, %s3040_s30  ;;  %p3046_p5 = scmp.lt.s32.totalorder %s3401_s12, %s3918_s2 }
  0x88   : > { %p3047_p12 = scmp.lt.s32.totalorder %s3045_s6, %s3040_s30 }
  0x89   : > { %p3043_p10 = pnand %p3041_p9, %p3370_p11 }
  0x8a   : > { %p3048_p6 = por %p3047_p12, %p3046_p5 }
  0x8b   : > { %p3044_p1 = pneg %p3043_p10 }
  0x8d   : > { %p3049_p2 = pnand %p3048_p6, %p3044_p1 }
  0x8f   : > { %3052 = shalt.err (!%p3049_p2)
}
  0x90   : > { %s3053_s13 = scalar_lea.vmem %s3439_s1, 512  ;;  %s3183_s3 = smov [#allocation7]  }
  0x91   : > { %p3054_p0 = scmp.ne.s32.totalorder %s3439_s1, %s3053_s13  ;;  %s3058_s9 = sshll.u32 %s3183_s3, 4  ;;  %s3059_s9 = int_to_ptr.vmem [resolvable:$false] %s3058_s9 }
  0x92   : > { %s3060_s21 = scalar_lea.vmem %s3059_s9, 1024  ;;  %p3061_p13 = scmp.lt.s32.totalorder %s3439_s1, %s3059_s9 }
  0x93   : > { %p3056_p7 = pnand %p3054_p0, %p3370_p11  ;;  %p3062_p8 = scmp.lt.s32.totalorder %s3060_s21, %s3053_s13 }
  0x95   : > { %p3057_p3 = pneg %p3056_p7  ;;  %p3063_p9 = por %p3062_p8, %p3061_p13 }
  0x97   : > { %p3064_p10 = pnand %p3063_p9, %p3057_p3 }
  0x99   : > { %3067 = shalt.err (!%p3064_p10)
}
  0x9a   : > { %2810 = dma.hbm_to_vmem [thread:$0]  (!%p3347_p4), %s3401_s12, 512, %s3439_s1, %s3364_s29, %s3972_s19, %s3972_s19, %s3971_s15  }
  0x9b   : > { %p3978_p11 = scmp.ne.s32.totalorder %s3965_s27, 0 }
  0x9c   : > { %s3494_s20 = sand.u32 (!%p3978_p11), 1, %s3166_s14   ;;  %p3979_p1 = scmp.ne.s32.totalorder (!%p3978_p11), %s3960_s24, 0 }
  0x9d   : > { %424 = sbr.rel (%p3978_p11) target bundleno = 3894 (0xf36), region = 56  ;;  %s2479_s11 = sshll.u32 (!%p3978_p11), %s3494_s20, 4 }
  0x9e   : > { %s427_s10 = scalar_lea.sflag (!%p3978_p11), [#allocation3], %s3494_s20  ;;  %s430_s18 = scalar_lea.vmem (!%p3978_p11), [#allocation2], %s2479_s11 }
  0xa2   : > { %3137 = dma.done.wait (%p3979_p1), %s427_s10, 256  }
  0xa3   : > { %3139 = vsyncadd (%p3979_p1), %s427_s10, 4294967040  ;;  %s435_s1 = sand.u32 1, %s3273_s17   ;;  %s2480_s27 = sshll.u32 %s3494_s20, 5 }
  0xa4   : > { %s436_s29 = scalar_lea.sflag [#allocation6], %s435_s1  ;;  %s3506_s15 = scalar_lea.vmem [#allocation5], %s2480_s27 }
  0xa5   : > { %3141 = dma.done.wait (%p3979_p1), %s436_s29, 1024  }
  0xa6   : > { %3143 = vsyncadd (%p3979_p1), %s436_s29, 4294966272  ;;  %s3512_s19 = scalar_lea.vmem [#allocation7], %s2480_s27  ;;  %p3980_p4 = scmp.eq.s32.totalorder %s3273_s17, 0 }
  0xa8   : > { %3145 = dma.done.wait (%p3980_p4), [#allocation9], 512   ;;  %p3981_p5 = pmov %p3980_p4 }
  0xa9   : > { %p3982_p12 = pmov %p3980_p4 }
  0xaa   : > { %3147 = vsyncadd (%p3981_p5), [#allocation9], 4294966784 }
  0xab   : > { %3149 = dma.done.wait (%p3982_p12), [#allocation12], 512   ;;  %p3983_p6 = pmov %p3980_p4 }
  0xac   : > { %v528_v0 = vld [vmem:[#allocation8 + $0x8] sm:$0xff]  ;;  %v619_v1 = vld [vmem:[#allocation10 + $0x8] sm:$0xff]  ;;  %v527_v2 = vld [vmem:[#allocation8] sm:$0xff]  ;;  %vm536_vm0 = vcmask 130048   ;;  %v3184_v8 = vmov 0.0   ;;  %vm3185_vm1 = vmmov 0  }
  0xad   : > { %3151 = vsyncadd (%p3983_p6), [#allocation12], 4294966784  ;;  %2626 = vmatprep.subr.mxu0 %v528_v0  ;;  %2633 = vmatprep.subr.mxu1 %v619_v1  ;;  %v618_v3 = vld [vmem:[#allocation10] sm:$0xff]  ;;  %v519_v5 = vld [vmem:[%s3506_s15] sm:$0xff]  ;;  %vm735_vm2 = vcmask 261120   ;;  %s3984_s30 = sld [smem:[#allocation30_spill]] }
  0xae   : > { %v517_v4 = vld [vmem:[%s430_s18] sm:$0xff]  ;;  %2627 = vmatpush3.msra.mxu0 %v528_v0  ;;  %2634 = vmatpush3.msra.mxu1 %v619_v1  ;;  %v518_v6 = vld [vmem:[%s430_s18 + $0x8] sm:$0xff]  ;;  %vm833_vm3 = vcmask 31744   ;;  %s3186_s25 = smov 124   ;;  %s3187_s8 = smov 120   ;;  %vm998_vm4 = vcmask 64512  }
  0xaf   : > { %2628 = vmatprep.subr.mxu0 %v527_v2  ;;  %2635 = vmatprep.subr.mxu1 %v618_v3  ;;  %v520_v7 = vld [vmem:[%s3506_s15 + $0x8] sm:$0xff]  ;;  %v521_v9 = vld [vmem:[%s3506_s15 + $0x10] sm:$0xff]  ;;  %v522_v10 = vld [vmem:[%s3506_s15 + $0x18] sm:$0xff]  ;;  %s3985_s26 = sld [smem:[#allocation31_spill]]  ;;  %s3188_s13 = smov 112   ;;  %vm1180_vm5 = vcmask 130112  }
  0xb0   : > { %2629 = vmatpush3.msra.mxu0 %v527_v2  ;;  %2630 = vmatprep.mubr.msk.f32.mxu0 %vm536_vm0, %v517_v4  ;;  %v727_v11 = vld [vmem:[#allocation11 + $0x18] sm:$0xff]  ;;  %v726_v12 = vld [vmem:[#allocation11 + $0x10] sm:$0xff]  ;;  %v523_v13 = vld [vmem:[%s3512_s19] sm:$0xff]  ;;  %s3189_s3 = smov 116   ;;  %s2486_s9 = sshll.u32 %s3494_s20, 6  ;;  %vm1360_vm6 = vcmask 195712  }
  0xb1   : > { %2636 = vmatpush3.msra.mxu1 %v618_v3  ;;  %2637 = vmatprep.mubr.msk.f32.mxu1 %vm536_vm0, %v519_v5  ;;  %v725_v14 = vld [vmem:[#allocation11 + $0x8] sm:$0xff]  ;;  %v724_v15 = vld [vmem:[#allocation11] sm:$0xff]  ;;  %v525_v17 = vld [vmem:[%s3512_s19 + $0x10] sm:$0xff]  ;;  %s3644_s21 = scalar_lea.vmem [#allocation14], %s2486_s9  ;;  %s3686_s10 = scalar_lea.vmem [#allocation13], %s2479_s11  ;;  %vm1540_vm7 = vcmask 261312  }
  0xb2   : > { %2631 = vmatmul.mubr.msk.f32.vlgmr.msra.gmra.mxu0 %vm536_vm0, %v518_v6  ;;  %2638 = vmatmul.mubr.msk.f32.vlgmr.msra.gmra.mxu1 %vm536_vm0, %v520_v7  ;;  %v524_v16 = vld [vmem:[%s3512_s19 + $0x8] sm:$0xff]  ;;  %v526_v18 = vld [vmem:[%s3512_s19 + $0x18] sm:$0xff]  ;;  %v2487_v19 = vld [vmem:[%s3920_s4] ss:$0 sm:$0xff]  ;;  %s3190_s18 = smov 104   ;;  %s3191_s11 = smov 8  }
  0xb3   : > { %2657 = vmatprep.subr.mxu1 %v3184_v8  ;;  %2640 = vmatprep.mubr.msk.f32.mxu1 %vm536_vm0, %v521_v9  ;;  %v3552_v20 = vld [vmem:[%s3984_s30] ss:$0 sm:$0xff]  ;;  %s3192_s1 = smov 16   ;;  %s3193_s27 = smov 24  }
  0xb4   : > { %2643 = vmatprep.subr.mxu0 %v727_v11  ;;  %2651 = vmatprep.mubr.msk.f32.mxu0 %vm735_vm2, %v523_v13  ;;  %s3986_s29 = sld [smem:[#allocation26_spill]]  ;;  %s2559_s15 = sshll.u32 %s3273_s17, 10 }
  0xb5   : > { %2644 = vmatpush3.msra.mxu0 %v727_v11  ;;  %v3589_v29 = vld [vmem:[%s3985_s26] ss:$0 sm:$0xff]  ;;  %s3987_s12 = sld [smem:[#allocation33_spill]]  ;;  %s2284_s22 = sshll.u32 %s3644_s21, 4  ;;  %s3834_s22 = int_to_ptr.vmem [resolvable:$true] %s2284_s22 }
  0xb6   : > { %2641 = vmatmul.mubr.msk.f32.gmra.mxu1 %vm536_vm0, %v522_v10  ;;  %2645 = vmatprep.subr.mxu0 %v726_v12  ;;  %s2254_s30 = scalar_lea.sflag [#allocation15], %s3494_s20 }
  0xb7   : > { %2661 = vmatprep.mubr.msk.f32.mxu1 %vm3185_vm1, %v3184_v8  ;;  %2646 = vmatpush3.msra.mxu0 %v726_v12 }
  0xb8   : > { %2647 = vmatprep.subr.mxu0 %v725_v14 }
  0xb9   : > { %2648 = vmatpush3.msra.mxu0 %v725_v14 }
  0xba   : > { %2649 = vmatprep.subr.mxu0 %v724_v15  ;;  %p3988_p0 = scmp.ne.s32.totalorder %s3986_s29, 0 }
  0xbb   : > { %2650 = vmatpush3.msra.mxu0 %v724_v15  ;;  %s3831_s28 = scalar_lea.hbm %s3987_s12, %s2559_s15 }
  0xbc   : > { %2652 = vmatmul.mubr.msk.f32.vlgmr.msra.gmra.mxu0 %vm735_vm2, %v524_v16  ;;  %2671 = vmatprep.subr.mxu0 %v3184_v8 }
  0xbd   : > { %2654 = vmatprep.mubr.msk.f32.mxu0 %vm735_vm2, %v525_v17 }
  0xc0   : > { %2655 = vmatmul.mubr.msk.f32.gmra.mxu0 %vm735_vm2, %v526_v18 }
  0xc1   : > { %2675 = vmatprep.mubr.msk.f32.mxu0 %vm3185_vm1, %v3184_v8 }
 0x172   : > { %v2632_v21 = vpop.f32.mrf.mxu0  ;;  %v2639_v22 = vpop.f32.mrf.mxu1 }
 0x173   : > { %v3554_v23 = vadd.f32 %v2632_v21, %v2487_v19  ;;  %v3557_v24 = vadd.f32 %v2639_v22, %v3552_v20 }
 0x174   : > { %v609_v25 = vpop.f32.mrf.mxu0  ;;  %v705_v26 = vpop.f32.mrf.mxu1 }
 0x175   : > { %v3559_v27 = vadd.f32 %v2487_v19, %v609_v25  ;;  %1004 = vrot.lane.b32.xlu0 %v3557_v24, %s3186_s25  ;;  %2658 = vmatpush3.xpose.msk.msra.mxu1 %vm833_vm3, %v3557_v24  ;;  %v3567_v28 = vadd.f32 %v3552_v20, %v705_v26 }
 0x176   : > { %2659 = vmatprep.subr.mxu1 %v3184_v8  ;;  %v3615_v40 = vpop.f32.mrf.mxu1 }
 0x177   : > { %1000 = vrot.lane.b32.xlu1 %v3559_v27, %s3186_s25 }
 0x178   : > { %v3617_v41 = vpop.f32.mrf.mxu1 }
 0x179   : > { %1002 = vrot.lane.b32.xlu0 %v3567_v28, %s3186_s25  ;;  %2660 = vmatpush3.xpose.msk.msra.mxu1 %vm833_vm3, %v3567_v28 }
 0x17a   : > { %2664 = vmatprep.subr.mxu1 %v3184_v8 }
 0x17b   : > { %1186 = vrot.lane.b32.xlu1 %v3557_v24, %s3187_s8 }
 0x17c   : > { %2662 = vmatmul.mubr.msk.f32.vlgmr.msra.gmra.mxu1 %vm833_vm3, %v3559_v27  ;;  %v2653_v30 = vpop.f32.mrf.mxu0 }
 0x17d   : > { %1184 = vrot.lane.b32.xlu0 %v3567_v28, %s3187_s8  ;;  %2668 = vmatprep.mubr.msk.f32.mxu1 %vm3185_vm1, %v3184_v8  ;;  %v3592_v31 = vadd.f32 %v2653_v30, %v3589_v29 }
 0x17e   : > { %v814_v32 = vpop.f32.mrf.mxu0 }
 0x17f   : > { %1182 = vrot.lane.b32.xlu1 %v3559_v27, %s3187_s8  ;;  %v3595_v33 = vadd.f32 %v3589_v29, %v814_v32  ;;  %2665 = vmatpush3.msra.mxu1 %v3592_v31 }
 0x180   : > { %2666 = vmatprep.subr.mxu1 %v3184_v8  ;;  %v3620_v45 = vpop.f32.mrf.mxu0 }
 0x181   : > { %2667 = vmatpush3.msra.mxu1 %v3595_v33  ;;  %v3671_v21 = vadd.f32 %v3620_v45, %v3589_v29 }
 0x182   : > { %2678 = vmatprep.subr.mxu1 %v3184_v8  ;;  %v3622_v46 = vpop.f32.mrf.mxu0 }
 0x1e7   : > { %v1005_v34 = vpop.permute.xlu0 %1004 }
 0x1e8   : > { %2672 = vmatpush3.xpose.msk.msra.mxu0 %vm833_vm3, %v1005_v34 }
 0x1e9   : > { %v1001_v35 = vpop.permute.xlu1 %1000  ;;  %2673 = vmatprep.subr.mxu0 %v3184_v8 }
 0x1eb   : > { %v1003_v36 = vpop.permute.xlu0 %1002 }
 0x1ec   : > { %2674 = vmatpush3.xpose.msk.msra.mxu0 %vm833_vm3, %v1003_v36 }
 0x1ed   : > { %2685 = vmatprep.subr.mxu0 %v3184_v8  ;;  %v1187_v37 = vpop.permute.xlu1 %1186 }
 0x1ef   : > { %2676 = vmatmul.mubr.msk.f32.vlgmr.msra.gmra.mxu0 %vm833_vm3, %v1001_v35  ;;  %v1185_v38 = vpop.permute.xlu0 %1184 }
 0x1f0   : > { %2686 = vmatpush3.xpose.msk.msra.mxu0 %vm833_vm3, %v1187_v37  ;;  %2689 = vmatprep.mubr.msk.f32.mxu0 %vm3185_vm1, %v3184_v8 }
 0x1f1   : > { %2687 = vmatprep.subr.mxu0 %v3184_v8  ;;  %v1183_v39 = vpop.permute.xlu1 %1182 }
 0x1f4   : > { %2688 = vmatpush3.xpose.msk.msra.mxu0 %vm833_vm3, %v1185_v38 }
 0x1f5   : > { %2706 = vmatprep.subr.mxu0 %v3184_v8 }
 0x1f7   : > { %2690 = vmatmul.mubr.msk.f32.vlgmr.msra.gmra.mxu0 %vm833_vm3, %v1183_v39 }
 0x1f8   : > { %2710 = vmatprep.mubr.msk.f32.mxu0 %vm3185_vm1, %v3184_v8 }
 0x23c   : > { %v909_v42 = vpop.f32.mrf.mxu1 }
 0x23d   : > { %v913_v43 = vsel %vm536_vm0, %v909_v42, -inf }
 0x23e   : > { %914 = vmax.xlane.f32.xlu0 %v913_v43  ;;  %v2663_v44 = vpop.f32.mrf.mxu1 }
 0x2af   : > { %v1078_v47 = vpop.f32.mrf.mxu0 }
 0x2b0   : > { %v1082_v48 = vsel %vm536_vm0, %v1078_v47, -inf }
 0x2b1   : > { %1083 = vmax.xlane.f32.xlu1 %v1082_v48  ;;  %v2677_v49 = vpop.f32.mrf.mxu0 }
 0x2b7   : > { %v1260_v50 = vpop.f32.mrf.mxu0 }
 0x2b8   : > { %v1264_v51 = vsel %vm536_vm0, %v1260_v50, -inf }
 0x2b9   : > { %v2691_v52 = vpop.f32.mrf.mxu0  ;;  %1265 = vmax.xlane.f32.xlu0 %v1264_v51 }
 0x2c2   : > { %1099 = vrot.lane.b32.xlu1 %v3592_v31, %s3187_s8 }
 0x2c6   : > { %1279 = vrot.lane.b32.xlu1 %v3592_v31, %s3188_s13 }
 0x2c7   : > { %v915_v53 = vpop.xlane.xlu0 %914 }
 0x2c8   : > { %v916_v54 = vsub.f32 %v909_v42, %v915_v53 }
 0x2ca   : > { %v917_v55 = vmul.f32 1.442695, %v916_v54  ;;  %1277 = vrot.lane.b32.xlu1 %v3595_v33, %s3188_s13 }
 0x2cc   : > { %2874 = vpow2.f32 %v917_v55 }
 0x2d9   : > { %v2875_v56 = vpop.eup %2874 }
 0x2da   : > { %v919_v57 = vsel %vm536_vm0, %v2875_v56, 0.0 }
 0x2db   : > { %920 = vadd.xlane.f32.xlu0 %v919_v57 }
 0x2f1   : > { %1097 = vrot.lane.b32.xlu0 %v3595_v33, %s3187_s8 }
 0x33a   : > { %v1084_v58 = vpop.xlane.xlu1 %1083 }
 0x33b   : > { %v1085_v59 = vsub.f32 %v1078_v47, %v1084_v58  ;;  %v3704_v47 = vadd.f32 %v3615_v40, %v3552_v20 }
 0x33d   : > { %v1086_v60 = vmul.f32 1.442695, %v1085_v59 }
 0x33e   : > { %v1100_v7 = vpop.permute.xlu1 %1099 }
 0x33f   : > { %2876 = vpow2.f32 %v1086_v60 }
 0x342   : > { %v1266_v61 = vpop.xlane.xlu0 %1265  ;;  %v1280_v10 = vpop.permute.xlu1 %1279 }
 0x343   : > { %v1267_v62 = vsub.f32 %v1260_v50, %v1266_v61 }
 0x345   : > { %v1268_v63 = vmul.f32 1.442695, %v1267_v62 }
 0x346   : > { %v1278_v11 = vpop.permute.xlu1 %1277 }
 0x347   : > { %2878 = vpow2.f32 %v1268_v63 }
 0x34c   : > { %v2877_v0 = vpop.eup %2876 }
 0x34d   : > { %v1088_v1 = vsel %vm536_vm0, %v2877_v0, 0.0 }
 0x34e   : > { %1089 = vadd.xlane.f32.xlu1 %v1088_v1 }
 0x354   : > { %v2879_v2 = vpop.eup %2878 }
 0x355   : > { %v1270_v3 = vsel %vm536_vm0, %v2879_v2, 0.0 }
 0x356   : > { %1271 = vadd.xlane.f32.xlu0 %v1270_v3 }
 0x35f   : > { %1364 = vrot.lane.b32.xlu1 %v3567_v28, %s3189_s3 }
 0x364   : > { %v921_v4 = vpop.xlane.xlu0 %920 }
 0x365   : > { %2880 = vrcp.f32 %v921_v4 }
 0x368   : > { %v1098_v9 = vpop.permute.xlu0 %1097 }
 0x36c   : > { %1366 = vrot.lane.b32.xlu0 %v3557_v24, %s3189_s3  ;;  %v3676_v24 = vadd.f32 %v3589_v29, %v3622_v46 }
 0x370   : > { %1362 = vrot.lane.b32.xlu0 %v3559_v27, %s3189_s3 }
 0x372   : > { %v2881_v5 = vpop.eup %2880 }
 0x373   : > { %v923_v6 = vmul.f32 %v2881_v5, %v2875_v56 }
 0x375   : > { %924 = vst.msk [vmem:[%s3644_s21] sm:$0xff] %vm536_vm0, %v923_v6  ;;  %2669 = vmatmul.mubr.msk.f32.vlgmr.msra.gmra.mxu1 %vm536_vm0, %v923_v6 }
 0x376   : > { %2679 = vmatpush3.msra.mxu1 %v1100_v7  ;;  %2682 = vmatprep.mubr.msk.f32.mxu1 %vm3185_vm1, %v3184_v8 }
 0x377   : > { %2680 = vmatprep.subr.mxu1 %v3184_v8 }
 0x378   : > { %2681 = vmatpush3.msra.mxu1 %v1098_v9 }
 0x379   : > { %2692 = vmatprep.subr.mxu1 %v3184_v8 }
 0x3d7   : > { %v1090_v12 = vpop.xlane.xlu1 %1089 }
 0x3d8   : > { %2882 = vrcp.f32 %v1090_v12 }
 0x3db   : > { %v1365_v19 = vpop.permute.xlu1 %1364 }
 0x3df   : > { %v1272_v13 = vpop.xlane.xlu0 %1271 }
 0x3e0   : > { %2884 = vrcp.f32 %v1272_v13 }
 0x3e3   : > { %v1367_v18 = vpop.permute.xlu0 %1366 }
 0x3e5   : > { %v2883_v14 = vpop.eup %2882 }
 0x3e6   : > { %v1092_v15 = vmul.f32 %v2883_v14, %v2877_v0 }
 0x3e7   : > { %v1363_v22 = vpop.permute.xlu0 %1362 }
 0x3e8   : > { %2507 = vst.msk [vmem:[%s3644_s21 + $0x8] sm:$0xff] %vm536_vm0, %v1092_v15  ;;  %2683 = vmatmul.mubr.msk.f32.vlgmr.msra.gmra.mxu1 %vm536_vm0, %v1092_v15 }
 0x3e9   : > { %2693 = vmatpush3.msra.mxu1 %v1280_v10  ;;  %2696 = vmatprep.mubr.msk.f32.mxu1 %vm3185_vm1, %v3184_v8 }
 0x3ea   : > { %2694 = vmatprep.subr.mxu1 %v3184_v8 }
 0x3eb   : > { %2695 = vmatpush3.msra.mxu1 %v1278_v11 }
 0x3ec   : > { %2699 = vmatprep.subr.mxu1 %v3184_v8 }
 0x3ed   : > { %v2885_v16 = vpop.eup %2884 }
 0x3ee   : > { %v1274_v17 = vmul.f32 %v2885_v16, %v2879_v2 }
 0x3f0   : > { %2512 = vst.msk [vmem:[%s3644_s21 + $0x10] sm:$0xff] %vm536_vm0, %v1274_v17  ;;  %2697 = vmatmul.mubr.msk.f32.vlgmr.msra.gmra.mxu1 %vm536_vm0, %v1274_v17 }
 0x3f1   : > { %2700 = vmatpush3.xpose.msk.msra.mxu1 %vm833_vm3, %v1367_v18  ;;  %2703 = vmatprep.mubr.msk.f32.mxu1 %vm3185_vm1, %v3184_v8 }
 0x3f2   : > { %2701 = vmatprep.subr.mxu1 %v3184_v8 }
 0x3f5   : > { %2702 = vmatpush3.xpose.msk.msra.mxu1 %vm833_vm3, %v1365_v19 }
 0x3f6   : > { %2720 = vmatprep.subr.mxu1 %v3184_v8 }
 0x3f8   : > { %2704 = vmatmul.mubr.msk.f32.vlgmr.msra.gmra.mxu1 %vm833_vm3, %v1363_v22 }
 0x3f9   : > { %2721 = vmatpush3.msra.mxu1 %v3671_v21  ;;  %2724 = vmatprep.mubr.msk.f32.mxu1 %vm3185_vm1, %v3184_v8 }
 0x3fa   : > { %2722 = vmatprep.subr.mxu1 %v3184_v8 }
 0x3fb   : > { %2723 = vmatpush3.msra.mxu1 %v3676_v24 }
 0x3fc   : > { %2727 = vmatprep.subr.mxu1 %v3184_v8 }
 0x435   : > { %v994_v25 = vpop.f32.mrf.mxu1 }
 0x436   : > { %999 = vst.msk [vmem:[%s3686_s10] sm:$0xff] %vm998_vm4, %v994_v25 }
 0x437   : > { %v2670_v26 = vpop.f32.mrf.mxu1 }
 0x4a8   : > { %v3690_v27 = vpop.f32.mrf.mxu1 }
 0x4aa   : > { %v2684_v28 = vpop.f32.mrf.mxu1 }
 0x4b0   : > { %v3692_v29 = vpop.f32.mrf.mxu1 }
 0x4b2   : > { %v2698_v30 = vpop.f32.mrf.mxu1 }
 0x4b8   : > { %v1440_v32 = vpop.f32.mrf.mxu1 }
 0x4b9   : > { %v1444_v34 = vsel %vm536_vm0, %v1440_v32, -inf }
 0x4ba   : > { %1445 = vmax.xlane.f32.xlu1 %v1444_v34  ;;  %v2705_v35 = vpop.f32.mrf.mxu1 }
 0x4cb   : > { %1457 = vrot.lane.b32.xlu1 %v3595_v33, %s3190_s18 }
 0x543   : > { %v1446_v36 = vpop.xlane.xlu1 %1445 }
 0x544   : > { %v1447_v37 = vsub.f32 %v1440_v32, %v1446_v36 }
 0x546   : > { %v1448_v38 = vmul.f32 1.442695, %v1447_v37 }
 0x547   : > { %v1458_v45 = vpop.permute.xlu1 %1457 }
 0x548   : > { %2886 = vpow2.f32 %v1448_v38 }
 0x555   : > { %v2887_v39 = vpop.eup %2886 }
 0x556   : > { %v1450_v42 = vsel %vm536_vm0, %v2887_v39, 0.0 }
 0x557   : > { %1451 = vadd.xlane.f32.xlu0 %v1450_v42 }
 0x56d   : > { %1459 = vrot.lane.b32.xlu0 %v3592_v31, %s3190_s18  ;;  %v3716_v31 = vadd.f32 %v3552_v20, %v3617_v41 }
 0x5e0   : > { %v1452_v43 = vpop.xlane.xlu0 %1451 }
 0x5e1   : > { %2888 = vrcp.f32 %v1452_v43 }
 0x5e4   : > { %v1460_v44 = vpop.permute.xlu0 %1459 }
 0x5e5   : > { %2707 = vmatpush3.msra.mxu0 %v1460_v44 }
 0x5e6   : > { %2708 = vmatprep.subr.mxu0 %v3184_v8 }
 0x5e7   : > { %2709 = vmatpush3.msra.mxu0 %v1458_v45 }
 0x5e8   : > { %2713 = vmatprep.subr.mxu0 %v3184_v8 }
 0x5ee   : > { %v2889_v33 = vpop.eup %2888 }
 0x5ef   : > { %v1454_v46 = vmul.f32 %v2889_v33, %v2887_v39 }
 0x5f1   : > { %2517 = vst.msk [vmem:[%s3644_s21 + $0x18] sm:$0xff] %vm536_vm0, %v1454_v46  ;;  %2711 = vmatmul.mubr.msk.f32.vlgmr.msra.gmra.mxu0 %vm536_vm0, %v1454_v46 }
 0x5f2   : > { %2714 = vmatpush3.xpose.msk.msra.mxu0 %vm833_vm3, %v3704_v47  ;;  %2717 = vmatprep.mubr.msk.f32.mxu0 %vm3185_vm1, %v3184_v8 }
 0x5f3   : > { %2715 = vmatprep.subr.mxu0 %v3184_v8 }
 0x5f6   : > { %2716 = vmatpush3.xpose.msk.msra.mxu0 %vm833_vm3, %v3716_v31 }
 0x5f7   : > { %2734 = vmatprep.subr.mxu0 %v3184_v8 }
 0x5f9   : > { %2718 = vmatmul.mubr.msk.f32.vlgmr.msra.gmra.mxu0 %vm833_vm3, %v3554_v23 }
 0x5fa   : > { %2738 = vmatprep.mubr.msk.f32.mxu0 %vm3185_vm1, %v3184_v8 }
 0x6b1   : > { %v3725_v40 = vpop.f32.mrf.mxu0 }
 0x6b3   : > { %v2712_v48 = vpop.f32.mrf.mxu0 }
 0x6b9   : > { %v1617_v49 = vpop.f32.mrf.mxu0 }
 0x6ba   : > { %v1621_v50 = vsel %vm536_vm0, %v1617_v49, -inf }
 0x6bb   : > { %1622 = vmax.xlane.f32.xlu1 %v1621_v50  ;;  %v2719_v20 = vpop.f32.mrf.mxu0 }
 0x6cc   : > { %1711 = vrot.lane.b32.xlu1 %v3716_v31, %s3186_s25 }
 0x6d0   : > { %1709 = vrot.lane.b32.xlu1 %v3554_v23, %s3186_s25 }
 0x6d4   : > { %1806 = vrot.lane.b32.xlu1 %v3676_v24, %s3187_s8 }
 0x744   : > { %v1623_v41 = vpop.xlane.xlu1 %1622 }
 0x745   : > { %v1624_v51 = vsub.f32 %v1617_v49, %v1623_v41 }
 0x747   : > { %v1625_v52 = vmul.f32 1.442695, %v1624_v51 }
 0x748   : > { %v1712_v59 = vpop.permute.xlu1 %1711 }
 0x749   : > { %2890 = vpow2.f32 %v1625_v52 }
 0x74c   : > { %v1710_v60 = vpop.permute.xlu1 %1709 }
 0x750   : > { %v1807_v6 = vpop.permute.xlu1 %1806 }
 0x756   : > { %v2891_v53 = vpop.eup %2890 }
 0x757   : > { %v1627_v54 = vsel %vm536_vm0, %v2891_v53, 0.0 }
 0x758   : > { %1628 = vadd.xlane.f32.xlu0 %v1627_v54 }
 0x76e   : > { %1713 = vrot.lane.b32.xlu0 %v3704_v47, %s3186_s25  ;;  %s3068_s25 = scalar_lea.vmem %s3834_s22, 1024 }
 0x76f   : > { %p3069_p2 = scmp.ne.s32.totalorder %s3834_s22, %s3068_s25 }
 0x771   : > { %p3070_p7 = pnand %p3069_p2, %p3988_p0 }
 0x773   : > { %p3071_p3 = pneg %p3070_p7 }
 0x7e1   : > { %v1629_v55 = vpop.xlane.xlu0 %1628 }
 0x7e2   : > { %2892 = vrcp.f32 %v1629_v55 }
 0x7e5   : > { %v1714_v58 = vpop.permute.xlu0 %1713 }
 0x7ef   : > { %v2893_v56 = vpop.eup %2892 }
 0x7f0   : > { %v1631_v57 = vmul.f32 %v2893_v56, %v2891_v53 }
 0x7f2   : > { %2522 = vst.msk [vmem:[%s3644_s21 + $0x20] sm:$0xff] %vm536_vm0, %v1631_v57  ;;  %2725 = vmatmul.mubr.msk.f32.vlgmr.msra.gmra.mxu1 %vm536_vm0, %v1631_v57 }
 0x7f3   : > { %2728 = vmatpush3.xpose.msk.msra.mxu1 %vm833_vm3, %v1714_v58  ;;  %2731 = vmatprep.mubr.msk.f32.mxu1 %vm3185_vm1, %v3184_v8 }
 0x7f4   : > { %2729 = vmatprep.subr.mxu1 %v3184_v8 }
 0x7f7   : > { %2730 = vmatpush3.xpose.msk.msra.mxu1 %vm833_vm3, %v1712_v59 }
 0x7f8   : > { %2748 = vmatprep.subr.mxu1 %v3184_v8 }
 0x7fa   : > { %2732 = vmatmul.mubr.msk.f32.vlgmr.msra.gmra.mxu1 %vm833_vm3, %v1710_v60 }
 0x7fb   : > { %2752 = vmatprep.mubr.msk.f32.mxu1 %vm3185_vm1, %v3184_v8 }
 0x8b2   : > { %v1703_v61 = vpop.f32.mrf.mxu1 }
 0x8b3   : > { %2524 = vst.msk [vmem:[%s3686_s10 + $0x8] sm:$0xff] %vm998_vm4, %v1703_v61 }
 0x8b4   : > { %v2726_v62 = vpop.f32.mrf.mxu1 }
 0x8ba   : > { %v1787_v63 = vpop.f32.mrf.mxu1 }
 0x8bb   : > { %v1791_v0 = vsel %vm536_vm0, %v1787_v63, -inf }
 0x8bc   : > { %1792 = vmax.xlane.f32.xlu0 %v1791_v0  ;;  %v2733_v1 = vpop.f32.mrf.mxu1 }
 0x8d2   : > { %1808 = vrot.lane.b32.xlu0 %v3671_v21, %s3187_s8 }
 0x8d6   : > { %1894 = vrot.lane.b32.xlu0 %v3704_v47, %s3187_s8 }
 0x8da   : > { %1890 = vrot.lane.b32.xlu0 %v3554_v23, %s3187_s8 }
 0x945   : > { %v1793_v2 = vpop.xlane.xlu0 %1792 }
 0x946   : > { %v1794_v3 = vsub.f32 %v1787_v63, %v1793_v2 }
 0x948   : > { %v1795_v4 = vmul.f32 1.442695, %v1794_v3 }
 0x949   : > { %v1809_v5 = vpop.permute.xlu0 %1808 }
 0x94a   : > { %2894 = vpow2.f32 %v1795_v4  ;;  %2735 = vmatpush3.msra.mxu0 %v1809_v5 }
 0x94b   : > { %2736 = vmatprep.subr.mxu0 %v3184_v8 }
 0x94c   : > { %2737 = vmatpush3.msra.mxu0 %v1807_v6 }
 0x94d   : > { %2741 = vmatprep.subr.mxu0 %v3184_v8  ;;  %v1895_v13 = vpop.permute.xlu0 %1894 }
 0x951   : > { %v1891_v15 = vpop.permute.xlu0 %1890 }
 0x957   : > { %v2895_v7 = vpop.eup %2894 }
 0x958   : > { %v1797_v9 = vsel %vm536_vm0, %v2895_v7, 0.0 }
 0x959   : > { %1798 = vadd.xlane.f32.xlu1 %v1797_v9 }
 0x96a   : > { %1892 = vrot.lane.b32.xlu1 %v3716_v31, %s3187_s8  ;;  %s3194_s8 = smov [#allocation14]  }
 0x96b   : > { %s3072_s6 = sshll.u32 %s3194_s8, 4  ;;  %s3073_s6 = int_to_ptr.vmem [resolvable:$false] %s3072_s6 }
 0x96c   : > { %s3074_s23 = scalar_lea.vmem %s3073_s6, 2048  ;;  %p3075_p13 = scmp.lt.s32.totalorder %s3834_s22, %s3073_s6 }
 0x96d   : > { %p3076_p8 = scmp.lt.s32.totalorder %s3074_s23, %s3068_s25 }
 0x96f   : > { %p3077_p9 = por %p3076_p8, %p3075_p13 }
 0x971   : > { %p3078_p10 = pnand %p3077_p9, %p3071_p3 }
 0x9e2   : > { %v1799_v10 = vpop.xlane.xlu1 %1798 }
 0x9e3   : > { %2896 = vrcp.f32 %v1799_v10 }
 0x9e6   : > { %v1893_v14 = vpop.permute.xlu1 %1892 }
 0x9f0   : > { %v2897_v11 = vpop.eup %2896 }
 0x9f1   : > { %v1801_v12 = vmul.f32 %v2897_v11, %v2895_v7 }
 0x9f3   : > { %2528 = vst.msk [vmem:[%s3644_s21 + $0x28] sm:$0xff] %vm536_vm0, %v1801_v12  ;;  %2739 = vmatmul.mubr.msk.f32.vlgmr.msra.gmra.mxu0 %vm536_vm0, %v1801_v12 }
 0x9f4   : > { %2742 = vmatpush3.xpose.msk.msra.mxu0 %vm833_vm3, %v1895_v13  ;;  %2745 = vmatprep.mubr.msk.f32.mxu0 %vm3185_vm1, %v3184_v8 }
 0x9f5   : > { %2743 = vmatprep.subr.mxu0 %v3184_v8 }
 0x9f8   : > { %2744 = vmatpush3.xpose.msk.msra.mxu0 %vm833_vm3, %v1893_v14 }
 0x9f9   : > { %2762 = vmatprep.subr.mxu0 %v3184_v8 }
 0x9fb   : > { %2746 = vmatmul.mubr.msk.f32.vlgmr.msra.gmra.mxu0 %vm833_vm3, %v1891_v15 }
 0x9fc   : > { %2766 = vmatprep.mubr.msk.f32.mxu0 %vm3185_vm1, %v3184_v8 }
 0xab3   : > { %v3775_v16 = vpop.f32.mrf.mxu0 }
 0xab5   : > { %v2740_v17 = vpop.f32.mrf.mxu0 }
 0xabb   : > { %v1968_v18 = vpop.f32.mrf.mxu0 }
 0xabc   : > { %v1972_v19 = vsel %vm536_vm0, %v1968_v18, -inf }
 0xabd   : > { %1973 = vmax.xlane.f32.xlu1 %v1972_v19  ;;  %v2747_v22 = vpop.f32.mrf.mxu0 }
 0xace   : > { %1985 = vrot.lane.b32.xlu1 %v3676_v24, %s3188_s13 }
 0xad2   : > { %2073 = vrot.lane.b32.xlu1 %v3704_v47, %s3189_s3 }
 0xad6   : > { %2069 = vrot.lane.b32.xlu1 %v3554_v23, %s3189_s3 }
 0xb46   : > { %v1974_v25 = vpop.xlane.xlu1 %1973 }
 0xb47   : > { %v1975_v26 = vsub.f32 %v1968_v18, %v1974_v25 }
 0xb49   : > { %v1976_v28 = vmul.f32 1.442695, %v1975_v26 }
 0xb4a   : > { %v1986_v23 = vpop.permute.xlu1 %1985 }
 0xb4b   : > { %2898 = vpow2.f32 %v1976_v28 }
 0xb4e   : > { %v2074_v38 = vpop.permute.xlu1 %2073 }
 0xb52   : > { %v2070_v42 = vpop.permute.xlu1 %2069 }
 0xb58   : > { %v2899_v30 = vpop.eup %2898 }
 0xb59   : > { %v1978_v32 = vsel %vm536_vm0, %v2899_v30, 0.0 }
 0xb5a   : > { %1979 = vadd.xlane.f32.xlu0 %v1978_v32 }
 0xb70   : > { %1987 = vrot.lane.b32.xlu0 %v3671_v21, %s3188_s13 }
 0xb74   : > { %2071 = vrot.lane.b32.xlu0 %v3716_v31, %s3189_s3 }
 0xbe3   : > { %v1980_v34 = vpop.xlane.xlu0 %1979 }
 0xbe4   : > { %2900 = vrcp.f32 %v1980_v34 }
 0xbe7   : > { %v1988_v35 = vpop.permute.xlu0 %1987 }
 0xbe8   : > { %2749 = vmatpush3.msra.mxu1 %v1988_v35 }
 0xbe9   : > { %2750 = vmatprep.subr.mxu1 %v3184_v8 }
 0xbea   : > { %2751 = vmatpush3.msra.mxu1 %v1986_v23 }
 0xbeb   : > { %2755 = vmatprep.subr.mxu1 %v3184_v8  ;;  %v2072_v39 = vpop.permute.xlu0 %2071 }
 0xbf1   : > { %v2901_v36 = vpop.eup %2900 }
 0xbf2   : > { %v1982_v37 = vmul.f32 %v2901_v36, %v2899_v30 }
 0xbf4   : > { %2534 = vst.msk [vmem:[%s3644_s21 + $0x30] sm:$0xff] %vm536_vm0, %v1982_v37  ;;  %2753 = vmatmul.mubr.msk.f32.vlgmr.msra.gmra.mxu1 %vm536_vm0, %v1982_v37 }
 0xbf5   : > { %2756 = vmatpush3.xpose.msk.msra.mxu1 %vm833_vm3, %v2074_v38  ;;  %2759 = vmatprep.mubr.msk.f32.mxu1 %vm3185_vm1, %v3184_v8 }
 0xbf6   : > { %2757 = vmatprep.subr.mxu1 %v3184_v8 }
 0xbf9   : > { %2758 = vmatpush3.xpose.msk.msra.mxu1 %vm833_vm3, %v2072_v39 }
 0xbfc   : > { %2760 = vmatmul.mubr.msk.f32.vlgmr.msra.gmra.mxu1 %vm833_vm3, %v2070_v42 }
 0xcb4   : > { %v2060_v43 = vpop.f32.mrf.mxu1 }
 0xcb6   : > { %v2754_v44 = vpop.f32.mrf.mxu1 }
 0xcbc   : > { %v2147_v45 = vpop.f32.mrf.mxu1 }
 0xcbd   : > { %v2151_v33 = vsel %vm536_vm0, %v2147_v45, -inf }
 0xcbe   : > { %2152 = vmax.xlane.f32.xlu0 %v2151_v33  ;;  %v2761_v46 = vpop.f32.mrf.mxu1 }
 0xcd4   : > { %2166 = vrot.lane.b32.xlu0 %v3671_v21, %s3190_s18 }
 0xcd8   : > { %1177 = vrot.lane.b32.xlu0 %v3690_v27, %s3191_s11 }
 0xcdc   : > { %1357 = vrot.lane.b32.xlu0 %v3692_v29, %s3192_s1 }
 0xce0   : > { %1537 = vrot.lane.b32.xlu0 %v3725_v40, %s3193_s27 }
 0xd47   : > { %v2153_v47 = vpop.xlane.xlu0 %2152 }
 0xd48   : > { %v2154_v31 = vsub.f32 %v2147_v45, %v2153_v47 }
 0xd4a   : > { %v2155_v48 = vmul.f32 1.442695, %v2154_v31 }
 0xd4b   : > { %v2167_v49 = vpop.permute.xlu0 %2166 }
 0xd4c   : > { %2902 = vpow2.f32 %v2155_v48  ;;  %2763 = vmatpush3.msra.mxu0 %v2167_v49 }
 0xd4d   : > { %2764 = vmatprep.subr.mxu0 %v3184_v8 }
 0xd4f   : > { %v1178_v21 = vpop.permute.xlu0 %1177 }
 0xd50   : > { %1181 = vst.msk [vmem:[%s3686_s10] sm:$0xff] %vm1180_vm5, %v1178_v21 }
 0xd53   : > { %v1358_v27 = vpop.permute.xlu0 %1357 }
 0xd54   : > { %1361 = vst.msk [vmem:[%s3686_s10] sm:$0xff] %vm1360_vm6, %v1358_v27 }
 0xd57   : > { %v1538_v29 = vpop.permute.xlu0 %1537 }
 0xd58   : > { %1541 = vst.msk [vmem:[%s3686_s10] sm:$0xff] %vm1540_vm7, %v1538_v29 }
 0xd59   : > { %v2903_v40 = vpop.eup %2902 }
 0xd5a   : > { %v2157_v50 = vsel %vm536_vm0, %v2903_v40, 0.0 }
 0xd5b   : > { %2158 = vadd.xlane.f32.xlu1 %v2157_v50 }
 0xd6c   : > { %2164 = vrot.lane.b32.xlu1 %v3676_v24, %s3190_s18 }
 0xd70   : > { %1886 = vrot.lane.b32.xlu1 %v3775_v16, %s3191_s11 }
 0xd74   : > { %2065 = vrot.lane.b32.xlu1 %v2060_v43, %s3192_s1 }
 0xde4   : > { %v2159_v8 = vpop.xlane.xlu1 %2158 }
 0xde5   : > { %2904 = vrcp.f32 %v2159_v8 }
 0xde8   : > { %v2165_v20 = vpop.permute.xlu1 %2164 }
 0xde9   : > { %2765 = vmatpush3.msra.mxu0 %v2165_v20 }
 0xdec   : > { %v1887_v41 = vpop.permute.xlu1 %1886 }
 0xded   : > { %2530 = vst.msk [vmem:[%s3686_s10 + $0x8] sm:$0xff] %vm1180_vm5, %v1887_v41 }
 0xdf0   : > { %v2066_v51 = vpop.permute.xlu1 %2065 }
 0xdf1   : > { %2536 = vst.msk [vmem:[%s3686_s10 + $0x8] sm:$0xff] %vm1360_vm6, %v2066_v51 }
 0xdf2   : > { %v2905_v52 = vpop.eup %2904 }
 0xdf3   : > { %v2161_v53 = vmul.f32 %v2905_v52, %v2903_v40 }
 0xdf5   : > { %2540 = vst.msk [vmem:[%s3644_s21 + $0x38] sm:$0xff] %vm536_vm0, %v2161_v53  ;;  %2767 = vmatmul.mubr.msk.f32.vlgmr.msra.gmra.mxu0 %vm536_vm0, %v2161_v53 }
 0xdf6   : > { %3081 = shalt.err (!%p3078_p10)
}
 0xdf7   : > { %s3082_s26 = scalar_lea.hbm %s3831_s28, 1024  ;;  %s3086_s9 = scalar_lea.hbm %s3987_s12, 2048 }
 0xdf8   : > { %p3083_p11 = scmp.ne.s32.totalorder %s3831_s28, %s3082_s26  ;;  %p3087_p5 = scmp.lt.s32.totalorder %s3831_s28, %s3987_s12 }
 0xdf9   : > { %p3088_p12 = scmp.lt.s32.totalorder %s3086_s9, %s3082_s26 }
 0xdfa   : > { %p3084_p1 = pnand %p3083_p11, %p3988_p0 }
 0xdfb   : > { %p3089_p6 = por %p3088_p12, %p3087_p5 }
 0xdfc   : > { %p3085_p4 = pneg %p3084_p1 }
 0xdfe   : > { %p3090_p2 = pnand %p3089_p6, %p3085_p4 }
 0xe00   : > { %3093 = shalt.err (!%p3090_p2)
}
 0xe01   : > { %s3195_s1 = smov 128   ;;  %s2557_s15 = sshll.u32 %s3273_s17, 8 }
 0xe02   : > { %2788 = dma.vmem_to_hbm [thread:$0]  (%p3988_p0), %s3834_s22, 1024, %s3831_s28, %s2254_s30, %s3195_s1, %s3195_s1, %s3191_s11  }
 0xe03   : > { %s2267_s19 = sshll.u32 %s3686_s10, 4  ;;  %s3989_s8 = sld [smem:[#allocation32_spill]]  ;;  %s3870_s19 = int_to_ptr.vmem [resolvable:$true] %s2267_s19 }
 0xe04   : > { %s2249_s28 = scalar_lea.sflag [#allocation4], %s3494_s20  ;;  %s3094_s22 = scalar_lea.vmem %s3870_s19, 256 }
 0xe05   : > { %p3095_p7 = scmp.ne.s32.totalorder %s3870_s19, %s3094_s22  ;;  %s3196_s17 = smov [#allocation13]  }
 0xe07   : > { %p3096_p3 = pnand %p3095_p7, %p3988_p0 }
 0xe09   : > { %s3868_s6 = scalar_lea.hbm %s3989_s8, %s2557_s15  ;;  %p3097_p13 = pneg %p3096_p3 }
 0xeb5   : > { %v2239_v24 = vpop.f32.mrf.mxu0 }
 0xeb6   : > { %2244 = vrot.lane.b32.xlu1 %v2239_v24, %s3193_s27  ;;  %s3098_s27 = sshll.u32 %s3196_s17, 4  ;;  %s3099_s27 = int_to_ptr.vmem [resolvable:$false] %s3098_s27 }
 0xeb7   : > { %v2768_v54 = vpop.f32.mrf.mxu0  ;;  %s3100_s30 = scalar_lea.vmem %s3099_s27, 512  ;;  %p3101_p8 = scmp.lt.s32.totalorder %s3870_s19, %s3099_s27 }
 0xeb8   : > { %p3102_p9 = scmp.lt.s32.totalorder %s3100_s30, %s3094_s22 }
 0xeba   : > { %p3103_p10 = por %p3102_p9, %p3101_p8 }
 0xebc   : > { %p3104_p11 = pnand %p3103_p10, %p3097_p13 }
 0xf28   : > { %v2245_v55 = vpop.permute.xlu1 %2244 }
 0xf29   : > { %2542 = vst.msk [vmem:[%s3686_s10 + $0x8] sm:$0xff] %vm1540_vm7, %v2245_v55 }
 0xf2a   : > { %3107 = shalt.err (!%p3104_p11)
}
 0xf2b   : > { %s3108_s10 = scalar_lea.hbm %s3868_s6, 256  ;;  %s3112_s26 = scalar_lea.hbm %s3989_s8, 512 }
 0xf2c   : > { %p3109_p1 = scmp.ne.s32.totalorder %s3868_s6, %s3108_s10  ;;  %p3113_p12 = scmp.lt.s32.totalorder %s3868_s6, %s3989_s8 }
 0xf2d   : > { %p3114_p6 = scmp.lt.s32.totalorder %s3112_s26, %s3108_s10 }
 0xf2e   : > { %p3110_p4 = pnand %p3109_p1, %p3988_p0 }
 0xf2f   : > { %p3115_p2 = por %p3114_p6, %p3113_p12 }
 0xf30   : > { %p3111_p5 = pneg %p3110_p4 }
 0xf32   : > { %p3116_p7 = pnand %p3115_p2, %p3111_p5 }
 0xf34   : > { %3119 = shalt.err (!%p3116_p7)
}
 0xf35   : > { %2787 = dma.vmem_to_hbm [thread:$0]  (%p3988_p0), %s3870_s19, 256, %s3868_s6, %s2249_s28, %s3195_s1, %s3195_s1, %s3191_s11  }
 0xf36 PF: > { %s3990_s9 = sld [smem:[#allocation22_spill]]  ;;  %p3993_p13 = scmp.ge.s32.totalorder %s3174_s16, 2 }
 0xf37   : > { %s3991_s21 = sld [smem:[#allocation27_spill]] }
 0xf3c   : > { %s2299_s18 = sand.u32 1, %s3990_s9  }
 0xf3d   : > { %p3992_p3 = scmp.ne.s32.totalorder %s3991_s21, 0  ;;  %s2300_s15 = scalar_lea.sflag [#allocation4], %s2299_s18 }
 0xf3f   : > { %p2812_p8 = pnand %p3993_p13, %p3992_p3 }
 0xf41   : > { %p2813_p9 = pneg %p2812_p8 }
 0xf43   : > { %3153 = dma.done.wait (%p2813_p9), %s2300_s15, 256  }
 0xf44   : > { %3155 = vsyncadd (%p2813_p9), %s2300_s15, 4294967040  ;;  %s2309_s24 = scalar_lea.sflag [#allocation15], %s2299_s18 }
 0xf45   : > { %3157 = dma.done.wait (%p2813_p9), %s2309_s24, 1024  }
 0xf46   : > { %3159 = vsyncadd (%p2813_p9), %s2309_s24, 4294966272  ;;  %s3994_s16 = sld [smem:[#allocation24_spill]]  ;;  %s3997_s13 = smov %s3166_s14 }
 0xf47   : > { %s3995_s29 = sld [smem:[#allocation23_spill]] }
 0xf48   : > { %s3996_s15 = sld [smem:[#allocation25_spill]] }
 0xf4c   : > { %p32_p0 = scmp.ge.s32.totalorder %s3994_s16, 4  }
 0xf4d   : > { %s3998_s14 = smov %s3995_s29 }
 0xf4e   :  { %34 = sbr.rel (!%p32_p0) target bundleno = 18 (0x12), region = 162 }
 0xf53   :  { %2314 = vsyncpa [#allocation3], 1 }
 0xf54   :  { %2316 = vsyncpa [#allocation3 + $0x1], 1 }
 0xf55   :  { %2317 = vsyncpa [#allocation6], 1 }
 0xf56   :  { %2319 = vsyncpa [#allocation6 + $0x1], 1 }
 0xf57   :  { %2320 = vsyncpa [#allocation9], 1 }
 0xf58   :  { %2321 = vsyncpa [#allocation12], 1 }
 0xf59   :  { %2322 = vsyncpa [#allocation4], 1 }
 0xf5a   :  { %2324 = vsyncpa [#allocation4 + $0x1], 1 }
 0xf5b   :  { %2325 = vsyncpa [#allocation15], 1 }
 0xf5c   :  { %2327 = vsyncpa [#allocation15 + $0x1], 1 }

</bundles_post_ra>
